<compile_context>
chip_gen: v7x
topology: tpu7x:2x2x1
jax: 0.10.0
libtpu: 0.0.40
codegen_flags: <defaults>
</compile_context>

<pallas_src>
import functools

import jax
import jax.numpy as jnp
from jax.experimental import pallas as pl
from jax.experimental.pallas import tpu as pltpu


def encoder_block_kernel(
    x_ref,        # (1, S, D)   input dtype (f32 here)
    wqkv_ref,     # (D, 3*H*A)  bf16, [Q heads | K heads | V heads]
    wo_ref,       # (D, D)      bf16
    bo_ref,       # (1, D)      f32
    g1_ref,       # (1, D)      f32  layer_norm_first gamma
    be1_ref,      # (1, D)      f32  layer_norm_first beta
    w1_ref,       # (D, F)      bf16 FFN first linear
    bf1_ref,      # (1, F)      f32
    w2_ref,       # (F, D)      bf16 FFN second linear
    bf2_ref,      # (1, D)      f32
    g2_ref,       # (1, D)      f32  layer_norm_second gamma
    be2_ref,      # (1, D)      f32  layer_norm_second beta
    o_ref,        # (1, S, D)
    *,
    num_heads,
    att_dim,
    eps,
):
    H, A = num_heads, att_dim
    HA = H * A
    scale = 1.0 / (att_dim ** 0.5)

    x = x_ref[0].astype(jnp.float32)        # (S, D) f32 for residuals / LN
    x_bf = x_ref[0].astype(jnp.bfloat16)    # bf16 MXU operand

    # ---- Multi-head attention (masked=False) ----
    # Fused QKV projection: one wide matmul instead of 3*H tiny dots.
    qkv = jnp.dot(x_bf, wqkv_ref[...],
                  preferred_element_type=jnp.float32)       # (S, 3*H*A) f32

    # Per-head attention with the output projection accumulated on the fly
    # (no lane-axis concatenate of head outputs).
    att = jnp.zeros(x.shape, dtype=jnp.float32)              # (S, D)
    for hi in range(H):
        q = qkv[:, hi * A:(hi + 1) * A] * scale               # scale folded into q
        k = qkv[:, HA + hi * A: HA + (hi + 1) * A]
        v = qkv[:, 2 * HA + hi * A: 2 * HA + (hi + 1) * A]

        scores = jnp.dot(q.astype(jnp.bfloat16),
                         k.astype(jnp.bfloat16).T,
                         preferred_element_type=jnp.float32)  # (S, S) f32
        # numerically-stable softmax over the last axis (torch dim=2)
        scores = scores - jnp.max(scores, axis=-1, keepdims=True)
        e = jnp.exp(scores)
        inv = pl.reciprocal(jnp.sum(e, axis=-1, keepdims=True), approx=True)
        p = e * inv                                           # (S, S)

        head = jnp.dot(p.astype(jnp.bfloat16),
                       v.astype(jnp.bfloat16),
                       preferred_element_type=jnp.float32)    # (S, A)
        # accumulate the output projection: head @ wo[hi*A:(hi+1)*A, :]
        att = att + jnp.dot(head.astype(jnp.bfloat16),
                            wo_ref[hi * A:(hi + 1) * A, :],
                            preferred_element_type=jnp.float32)
    att = att + bo_ref[0]

    # ---- residual + LayerNorm 1 (f32) ----
    h1 = x + att
    mu1 = jnp.mean(h1, axis=-1, keepdims=True)
    var1 = jnp.mean((h1 - mu1) ** 2, axis=-1, keepdims=True)
    h1n = (h1 - mu1) * jax.lax.rsqrt(var1 + eps) * g1_ref[0] + be1_ref[0]

    # ---- FeedForwardNetwork: Linear(D, F) -> ReLU -> Linear(F, D) ----
    z = jnp.dot(h1n.astype(jnp.bfloat16), w1_ref[...],
                preferred_element_type=jnp.float32) + bf1_ref[0]
    z = jnp.maximum(z, 0.0)
    ff = jnp.dot(z.astype(jnp.bfloat16), w2_ref[...],
                 preferred_element_type=jnp.float32) + bf2_ref[0]

    # ---- residual + LayerNorm 2 (f32) ----
    h2 = h1n + ff
    mu2 = jnp.mean(h2, axis=-1, keepdims=True)
    var2 = jnp.mean((h2 - mu2) ** 2, axis=-1, keepdims=True)
    out = (h2 - mu2) * jax.lax.rsqrt(var2 + eps) * g2_ref[0] + be2_ref[0]

    o_ref[0] = out.astype(o_ref.dtype)


def encoder_block(x, params, *, num_heads, att_dim, eps=1e-5):
    B, S, D = x.shape
    H, A = num_heads, att_dim
    F = params["w1"].shape[1]

    # Pack per-head Q/K/V weights into one (D, 3*H*A) bf16 matrix wrapper-side.
    def flat_heads(w):  # (H, D, A) -> (D, H*A); head hi lives at cols [hi*A, (hi+1)*A)
        return jnp.transpose(w, (1, 0, 2)).reshape(D, H * A)

    wqkv = jnp.concatenate(
        [flat_heads(params["wq"]), flat_heads(params["wk"]), flat_heads(params["wv"])],
        axis=1,
    ).astype(jnp.bfloat16)

    weights = [
        wqkv,                                     # (D, 3*H*A) bf16
        params["wo"].astype(jnp.bfloat16),        # (D, D)
        params["bo"].astype(jnp.float32),         # (1, D)
        params["g1"].astype(jnp.float32),
        params["be1"].astype(jnp.float32),
        params["w1"].astype(jnp.bfloat16),        # (D, F)
        params["bf1"].astype(jnp.float32),        # (1, F)
        params["w2"].astype(jnp.bfloat16),        # (F, D)
        params["bf2"].astype(jnp.float32),
        params["g2"].astype(jnp.float32),
        params["be2"].astype(jnp.float32),
    ]

    kernel = functools.partial(
        encoder_block_kernel, num_heads=H, att_dim=A, eps=eps
    )

    def full_spec(w):
        rank = w.ndim
        return pl.BlockSpec(w.shape, (lambda r: (lambda b: (0,) * r))(rank))

    in_specs = [pl.BlockSpec((1, S, D), lambda b: (b, 0, 0))]
    in_specs += [full_spec(w) for w in weights]
    out_specs = pl.BlockSpec((1, S, D), lambda b: (b, 0, 0))

    # Advisory cost estimate (helps XLA schedule around the custom call).
    flops = B * (
        2 * S * D * (3 * H * A)      # fused QKV projection
        + 4 * S * S * H * A          # QK^T + PV
        + 2 * S * H * A * D          # output projection
        + 4 * S * D * F              # FFN
    )
    bytes_accessed = (
        2 * B * S * D * 4                                  # x in + out (f32)
        + 2 * (D * 3 * H * A + D * D + 2 * D * F)          # bf16 weights
        + 4 * (6 * D + F + D)                              # f32 biases / LN params
    )
    cost = pl.CostEstimate(
        flops=flops, transcendentals=B * H * S * S, bytes_accessed=bytes_accessed
    )

    # Batch grid kept "parallel": on v7x the two TensorCores each take half the
    # batches; on single-TC chips the per-step overhead is negligible at B=2.
    return pl.pallas_call(
        kernel,
        out_shape=jax.ShapeDtypeStruct((B, S, D), x.dtype),
        grid=(B,),
        in_specs=in_specs,
        out_specs=out_specs,
        compiler_params=pltpu.CompilerParams(dimension_semantics=("parallel",)),
        cost_estimate=cost,
    )(x, *weights)


def encoder_block_ref(x, params, *, num_heads, att_dim, eps=1e-5):
    """Pure-JAX reference (mirrors the PyTorch forward), f32 math on the same weights."""
    f32 = lambda a: a.astype(jnp.float32)

    def ln(v, g, b):
        mu = jnp.mean(v, axis=-1, keepdims=True)
        var = jnp.mean((v - mu) ** 2, axis=-1, keepdims=True)
        return (v - mu) * jax.lax.rsqrt(var + eps) * g + b

    heads = []
    for hi in range(num_heads):
        q = x @ f32(params["wq"][hi])
        k = x @ f32(params["wk"][hi])
        v = x @ f32(params["wv"][hi])
        scores = jnp.einsum("bsa,bta->bst", q, k) / (att_dim ** 0.5)
        p = jax.nn.softmax(scores, axis=-1)
        heads.append(jnp.einsum("bst,bta->bsa", p, v))
    att = jnp.concatenate(heads, axis=-1)
    att = att @ f32(params["wo"]) + f32(params["bo"])[0]
    h1 = ln(x + att, f32(params["g1"])[0], f32(params["be1"])[0])
    ff = (
        jnp.maximum(h1 @ f32(params["w1"]) + f32(params["bf1"])[0], 0.0)
        @ f32(params["w2"]) + f32(params["bf2"])[0]
    )
    return ln(h1 + ff, f32(params["g2"])[0], f32(params["be2"])[0])


if __name__ == "__main__":
    # small shapes consistent with the module: inp_dim = h * att_dim
    B, S = 2, 8
    H, A = 4, 8
    D = H * A          # inp_dim = 32
    F = 2048           # FFN hidden dim (fixed in FeedForwardNetwork)

    key = jax.random.PRNGKey(0)
    keys = jax.random.split(key, 12)

    # Matmul weights are stored in bf16 (MXU-native); biases / LN params in f32.
    params = {
        "wq": (jax.random.normal(keys[0], (H, D, A), jnp.float32) * 0.1).astype(jnp.bfloat16),
        "wk": (jax.random.normal(keys[1], (H, D, A), jnp.float32) * 0.1).astype(jnp.bfloat16),
        "wv": (jax.random.normal(keys[2], (H, D, A), jnp.float32) * 0.1).astype(jnp.bfloat16),
        "wo": (jax.random.normal(keys[3], (D, D), jnp.float32) * 0.1).astype(jnp.bfloat16),
        "bo": jax.random.normal(keys[4], (1, D), jnp.float32) * 0.1,
        "g1": jnp.ones((1, D), jnp.float32),
        "be1": jnp.zeros((1, D), jnp.float32),
        "w1": (jax.random.normal(keys[5], (D, F), jnp.float32) * 0.05).astype(jnp.bfloat16),
        "bf1": jax.random.normal(keys[6], (1, F), jnp.float32) * 0.05,
        "w2": (jax.random.normal(keys[7], (F, D), jnp.float32) * 0.05).astype(jnp.bfloat16),
        "bf2": jax.random.normal(keys[8], (1, D), jnp.float32) * 0.05,
        "g2": jnp.ones((1, D), jnp.float32),
        "be2": jnp.zeros((1, D), jnp.float32),
    }

    x = jax.random.normal(keys[9], (B, S, D), jnp.float32)

    out = encoder_block(x, params, num_heads=H, att_dim=A)
    out = jax.block_until_ready(out)

    ref = encoder_block_ref(x, params, num_heads=H, att_dim=A)
    assert out.shape == (B, S, D)
    # bf16 matmul operands (f32 accumulation) => loosened tolerance vs f32 reference.
    assert jnp.allclose(out, ref, atol=2e-2, rtol=2e-2), "mismatch vs reference"

    print("KERNEL_OK")
</pallas_src>

<mosaic_0001>
module attributes {stable_mosaic.version = 11 : i64} {
  func.func @encoder_block_kernel(%arg0: i32, %arg1: memref<1x8x32xf32, #tpu.memory_space<vmem>>, %arg2: memref<32x96xbf16, #tpu.memory_space<vmem>>, %arg3: memref<32x32xbf16, #tpu.memory_space<vmem>>, %arg4: memref<1x32xf32, #tpu.memory_space<vmem>>, %arg5: memref<1x32xf32, #tpu.memory_space<vmem>>, %arg6: memref<1x32xf32, #tpu.memory_space<vmem>>, %arg7: memref<32x2048xbf16, #tpu.memory_space<vmem>>, %arg8: memref<1x2048xf32, #tpu.memory_space<vmem>>, %arg9: memref<2048x32xbf16, #tpu.memory_space<vmem>>, %arg10: memref<1x32xf32, #tpu.memory_space<vmem>>, %arg11: memref<1x32xf32, #tpu.memory_space<vmem>>, %arg12: memref<1x32xf32, #tpu.memory_space<vmem>>, %arg13: memref<1x8x32xf32, #tpu.memory_space<vmem>>) attributes {dimension_semantics = [#tpu.dimension_semantics<parallel>], iteration_bounds = array<i64: 2>, scalar_prefetch = 0 : i64, scratch_operands = 0 : i64, tpu.core_type = #tpu.core_type<tc>, window_params = [{transform_indices = @transform_0, window_bounds = array<i64: 1, 8, 32>}, {pipeline_mode = #tpu.pipeline_mode<synchronous>, transform_indices = @transform_1, window_bounds = array<i64: 32, 96>}, {pipeline_mode = #tpu.pipeline_mode<synchronous>, transform_indices = @transform_2, window_bounds = array<i64: 32, 32>}, {pipeline_mode = #tpu.pipeline_mode<synchronous>, transform_indices = @transform_3, window_bounds = array<i64: 1, 32>}, {pipeline_mode = #tpu.pipeline_mode<synchronous>, transform_indices = @transform_4, window_bounds = array<i64: 1, 32>}, {pipeline_mode = #tpu.pipeline_mode<synchronous>, transform_indices = @transform_5, window_bounds = array<i64: 1, 32>}, {pipeline_mode = #tpu.pipeline_mode<synchronous>, transform_indices = @transform_6, window_bounds = array<i64: 32, 2048>}, {pipeline_mode = #tpu.pipeline_mode<synchronous>, transform_indices = @transform_7, window_bounds = array<i64: 1, 2048>}, {pipeline_mode = #tpu.pipeline_mode<synchronous>, transform_indices = @transform_8, window_bounds = array<i64: 2048, 32>}, {pipeline_mode = #tpu.pipeline_mode<synchronous>, transform_indices = @transform_9, window_bounds = array<i64: 1, 32>}, {pipeline_mode = #tpu.pipeline_mode<synchronous>, transform_indices = @transform_10, window_bounds = array<i64: 1, 32>}, {pipeline_mode = #tpu.pipeline_mode<synchronous>, transform_indices = @transform_11, window_bounds = array<i64: 1, 32>}, {transform_indices = @transform_12, window_bounds = array<i64: 1, 8, 32>}]} {
    %c0 = arith.constant 0 : index
    %c0_0 = arith.constant 0 : index
    %c0_1 = arith.constant 0 : index
    %0 = vector.load %arg1[%c0, %c0_0, %c0_1] : memref<1x8x32xf32, #tpu.memory_space<vmem>>, vector<1x8x32xf32>
    %1 = vector.shape_cast %0 : vector<1x8x32xf32> to vector<8x32xf32>
    %c0_2 = arith.constant 0 : index
    %c0_3 = arith.constant 0 : index
    %c0_4 = arith.constant 0 : index
    %2 = vector.load %arg1[%c0_2, %c0_3, %c0_4] : memref<1x8x32xf32, #tpu.memory_space<vmem>>, vector<1x8x32xf32>
    %3 = vector.shape_cast %2 : vector<1x8x32xf32> to vector<8x32xf32>
    %4 = arith.truncf %3 : vector<8x32xf32> to vector<8x32xbf16>
    %c0_5 = arith.constant 0 : index
    %c0_6 = arith.constant 0 : index
    %5 = vector.load %arg2[%c0_5, %c0_6] : memref<32x96xbf16, #tpu.memory_space<vmem>>, vector<32x96xbf16>
    %cst = arith.constant dense<0.000000e+00> : vector<8x96xf32>
    %6 = tpu.matmul %4, %5, %cst {dimension_numbers = #tpu.dot_dimension_numbers<[1], [0], [0], [1], [0, 0, 1, 1], [], []>} : vector<8x32xbf16>, vector<32x96xbf16>, vector<8x96xf32> -> vector<8x96xf32>
    %cst_7 = arith.constant 0.000000e+00 : f32
    %7 = vector.broadcast %cst_7 : f32 to vector<8x32xf32>
    %8 = vector.extract_strided_slice %6 {offsets = [0, 0], sizes = [8, 8], strides = [1, 1]} : vector<8x96xf32> to vector<8x8xf32>
    %cst_8 = arith.constant 0.353553385 : f32
    %9 = vector.broadcast %cst_8 : f32 to vector<8x8xf32>
    %10 = arith.mulf %8, %9 : vector<8x8xf32>
    %11 = vector.extract_strided_slice %6 {offsets = [0, 32], sizes = [8, 8], strides = [1, 1]} : vector<8x96xf32> to vector<8x8xf32>
    %12 = vector.extract_strided_slice %6 {offsets = [0, 64], sizes = [8, 8], strides = [1, 1]} : vector<8x96xf32> to vector<8x8xf32>
    %13 = arith.truncf %10 : vector<8x8xf32> to vector<8x8xbf16>
    %14 = arith.truncf %11 : vector<8x8xf32> to vector<8x8xbf16>
    %15 = tpu.transpose %14, [1, 0] : vector<8x8xbf16> -> vector<8x8xbf16>
    %cst_9 = arith.constant dense<0.000000e+00> : vector<8x8xf32>
    %16 = tpu.matmul %13, %15, %cst_9 {dimension_numbers = #tpu.dot_dimension_numbers<[1], [0], [0], [1], [0, 0, 1, 1], [], []>} : vector<8x8xbf16>, vector<8x8xbf16>, vector<8x8xf32> -> vector<8x8xf32>
    %cst_10 = arith.constant dense<0xFF800000> : vector<8xf32>
    %17 = vector.multi_reduction <maximumf>, %16, %cst_10 [1] : vector<8x8xf32> to vector<8xf32>
    %18 = vector.shape_cast %17 : vector<8xf32> to vector<8x1xf32>
    %19 = vector.broadcast %18 : vector<8x1xf32> to vector<8x8xf32>
    %20 = arith.subf %16, %19 : vector<8x8xf32>
    %21 = math.exp %20 : vector<8x8xf32>
    %cst_11 = arith.constant dense<0.000000e+00> : vector<8xf32>
    %22 = vector.multi_reduction <add>, %21, %cst_11 [1] : vector<8x8xf32> to vector<8xf32>
    %23 = vector.shape_cast %22 : vector<8xf32> to vector<8x1xf32>
    %24 = tpu.reciprocal %23 {approx = true} : vector<8x1xf32> -> vector<8x1xf32>
    %25 = vector.broadcast %24 : vector<8x1xf32> to vector<8x8xf32>
    %26 = arith.mulf %21, %25 : vector<8x8xf32>
    %27 = arith.truncf %26 : vector<8x8xf32> to vector<8x8xbf16>
    %28 = arith.truncf %12 : vector<8x8xf32> to vector<8x8xbf16>
    %cst_12 = arith.constant dense<0.000000e+00> : vector<8x8xf32>
    %29 = tpu.matmul %27, %28, %cst_12 {dimension_numbers = #tpu.dot_dimension_numbers<[1], [0], [0], [1], [0, 0, 1, 1], [], []>} : vector<8x8xbf16>, vector<8x8xbf16>, vector<8x8xf32> -> vector<8x8xf32>
    %30 = arith.truncf %29 : vector<8x8xf32> to vector<8x8xbf16>
    %c0_13 = arith.constant 0 : index
    %c0_14 = arith.constant 0 : index
    %31 = vector.load %arg3[%c0_13, %c0_14] : memref<32x32xbf16, #tpu.memory_space<vmem>>, vector<8x32xbf16>
    %cst_15 = arith.constant dense<0.000000e+00> : vector<8x32xf32>
    %32 = tpu.matmul %30, %31, %cst_15 {dimension_numbers = #tpu.dot_dimension_numbers<[1], [0], [0], [1], [0, 0, 1, 1], [], []>} : vector<8x8xbf16>, vector<8x32xbf16>, vector<8x32xf32> -> vector<8x32xf32>
    %33 = arith.addf %7, %32 : vector<8x32xf32>
    %34 = vector.extract_strided_slice %6 {offsets = [0, 8], sizes = [8, 8], strides = [1, 1]} : vector<8x96xf32> to vector<8x8xf32>
    %cst_16 = arith.constant 0.353553385 : f32
    %35 = vector.broadcast %cst_16 : f32 to vector<8x8xf32>
    %36 = arith.mulf %34, %35 : vector<8x8xf32>
    %37 = vector.extract_strided_slice %6 {offsets = [0, 40], sizes = [8, 8], strides = [1, 1]} : vector<8x96xf32> to vector<8x8xf32>
    %38 = vector.extract_strided_slice %6 {offsets = [0, 72], sizes = [8, 8], strides = [1, 1]} : vector<8x96xf32> to vector<8x8xf32>
    %39 = arith.truncf %36 : vector<8x8xf32> to vector<8x8xbf16>
    %40 = arith.truncf %37 : vector<8x8xf32> to vector<8x8xbf16>
    %41 = tpu.transpose %40, [1, 0] : vector<8x8xbf16> -> vector<8x8xbf16>
    %cst_17 = arith.constant dense<0.000000e+00> : vector<8x8xf32>
    %42 = tpu.matmul %39, %41, %cst_17 {dimension_numbers = #tpu.dot_dimension_numbers<[1], [0], [0], [1], [0, 0, 1, 1], [], []>} : vector<8x8xbf16>, vector<8x8xbf16>, vector<8x8xf32> -> vector<8x8xf32>
    %cst_18 = arith.constant dense<0xFF800000> : vector<8xf32>
    %43 = vector.multi_reduction <maximumf>, %42, %cst_18 [1] : vector<8x8xf32> to vector<8xf32>
    %44 = vector.shape_cast %43 : vector<8xf32> to vector<8x1xf32>
    %45 = vector.broadcast %44 : vector<8x1xf32> to vector<8x8xf32>
    %46 = arith.subf %42, %45 : vector<8x8xf32>
    %47 = math.exp %46 : vector<8x8xf32>
    %cst_19 = arith.constant dense<0.000000e+00> : vector<8xf32>
    %48 = vector.multi_reduction <add>, %47, %cst_19 [1] : vector<8x8xf32> to vector<8xf32>
    %49 = vector.shape_cast %48 : vector<8xf32> to vector<8x1xf32>
    %50 = tpu.reciprocal %49 {approx = true} : vector<8x1xf32> -> vector<8x1xf32>
    %51 = vector.broadcast %50 : vector<8x1xf32> to vector<8x8xf32>
    %52 = arith.mulf %47, %51 : vector<8x8xf32>
    %53 = arith.truncf %52 : vector<8x8xf32> to vector<8x8xbf16>
    %54 = arith.truncf %38 : vector<8x8xf32> to vector<8x8xbf16>
    %cst_20 = arith.constant dense<0.000000e+00> : vector<8x8xf32>
    %55 = tpu.matmul %53, %54, %cst_20 {dimension_numbers = #tpu.dot_dimension_numbers<[1], [0], [0], [1], [0, 0, 1, 1], [], []>} : vector<8x8xbf16>, vector<8x8xbf16>, vector<8x8xf32> -> vector<8x8xf32>
    %56 = arith.truncf %55 : vector<8x8xf32> to vector<8x8xbf16>
    %c8 = arith.constant 8 : index
    %c0_21 = arith.constant 0 : index
    %57 = vector.load %arg3[%c8, %c0_21] : memref<32x32xbf16, #tpu.memory_space<vmem>>, vector<8x32xbf16>
    %cst_22 = arith.constant dense<0.000000e+00> : vector<8x32xf32>
    %58 = tpu.matmul %56, %57, %cst_22 {dimension_numbers = #tpu.dot_dimension_numbers<[1], [0], [0], [1], [0, 0, 1, 1], [], []>} : vector<8x8xbf16>, vector<8x32xbf16>, vector<8x32xf32> -> vector<8x32xf32>
    %59 = arith.addf %33, %58 : vector<8x32xf32>
    %60 = vector.extract_strided_slice %6 {offsets = [0, 16], sizes = [8, 8], strides = [1, 1]} : vector<8x96xf32> to vector<8x8xf32>
    %cst_23 = arith.constant 0.353553385 : f32
    %61 = vector.broadcast %cst_23 : f32 to vector<8x8xf32>
    %62 = arith.mulf %60, %61 : vector<8x8xf32>
    %63 = vector.extract_strided_slice %6 {offsets = [0, 48], sizes = [8, 8], strides = [1, 1]} : vector<8x96xf32> to vector<8x8xf32>
    %64 = vector.extract_strided_slice %6 {offsets = [0, 80], sizes = [8, 8], strides = [1, 1]} : vector<8x96xf32> to vector<8x8xf32>
    %65 = arith.truncf %62 : vector<8x8xf32> to vector<8x8xbf16>
    %66 = arith.truncf %63 : vector<8x8xf32> to vector<8x8xbf16>
    %67 = tpu.transpose %66, [1, 0] : vector<8x8xbf16> -> vector<8x8xbf16>
    %cst_24 = arith.constant dense<0.000000e+00> : vector<8x8xf32>
    %68 = tpu.matmul %65, %67, %cst_24 {dimension_numbers = #tpu.dot_dimension_numbers<[1], [0], [0], [1], [0, 0, 1, 1], [], []>} : vector<8x8xbf16>, vector<8x8xbf16>, vector<8x8xf32> -> vector<8x8xf32>
    %cst_25 = arith.constant dense<0xFF800000> : vector<8xf32>
    %69 = vector.multi_reduction <maximumf>, %68, %cst_25 [1] : vector<8x8xf32> to vector<8xf32>
    %70 = vector.shape_cast %69 : vector<8xf32> to vector<8x1xf32>
    %71 = vector.broadcast %70 : vector<8x1xf32> to vector<8x8xf32>
    %72 = arith.subf %68, %71 : vector<8x8xf32>
    %73 = math.exp %72 : vector<8x8xf32>
    %cst_26 = arith.constant dense<0.000000e+00> : vector<8xf32>
    %74 = vector.multi_reduction <add>, %73, %cst_26 [1] : vector<8x8xf32> to vector<8xf32>
    %75 = vector.shape_cast %74 : vector<8xf32> to vector<8x1xf32>
    %76 = tpu.reciprocal %75 {approx = true} : vector<8x1xf32> -> vector<8x1xf32>
    %77 = vector.broadcast %76 : vector<8x1xf32> to vector<8x8xf32>
    %78 = arith.mulf %73, %77 : vector<8x8xf32>
    %79 = arith.truncf %78 : vector<8x8xf32> to vector<8x8xbf16>
    %80 = arith.truncf %64 : vector<8x8xf32> to vector<8x8xbf16>
    %cst_27 = arith.constant dense<0.000000e+00> : vector<8x8xf32>
    %81 = tpu.matmul %79, %80, %cst_27 {dimension_numbers = #tpu.dot_dimension_numbers<[1], [0], [0], [1], [0, 0, 1, 1], [], []>} : vector<8x8xbf16>, vector<8x8xbf16>, vector<8x8xf32> -> vector<8x8xf32>
    %82 = arith.truncf %81 : vector<8x8xf32> to vector<8x8xbf16>
    %c16 = arith.constant 16 : index
    %c0_28 = arith.constant 0 : index
    %83 = vector.load %arg3[%c16, %c0_28] : memref<32x32xbf16, #tpu.memory_space<vmem>>, vector<8x32xbf16>
    %cst_29 = arith.constant dense<0.000000e+00> : vector<8x32xf32>
    %84 = tpu.matmul %82, %83, %cst_29 {dimension_numbers = #tpu.dot_dimension_numbers<[1], [0], [0], [1], [0, 0, 1, 1], [], []>} : vector<8x8xbf16>, vector<8x32xbf16>, vector<8x32xf32> -> vector<8x32xf32>
    %85 = arith.addf %59, %84 : vector<8x32xf32>
    %86 = vector.extract_strided_slice %6 {offsets = [0, 24], sizes = [8, 8], strides = [1, 1]} : vector<8x96xf32> to vector<8x8xf32>
    %cst_30 = arith.constant 0.353553385 : f32
    %87 = vector.broadcast %cst_30 : f32 to vector<8x8xf32>
    %88 = arith.mulf %86, %87 : vector<8x8xf32>
    %89 = vector.extract_strided_slice %6 {offsets = [0, 56], sizes = [8, 8], strides = [1, 1]} : vector<8x96xf32> to vector<8x8xf32>
    %90 = vector.extract_strided_slice %6 {offsets = [0, 88], sizes = [8, 8], strides = [1, 1]} : vector<8x96xf32> to vector<8x8xf32>
    %91 = arith.truncf %88 : vector<8x8xf32> to vector<8x8xbf16>
    %92 = arith.truncf %89 : vector<8x8xf32> to vector<8x8xbf16>
    %93 = tpu.transpose %92, [1, 0] : vector<8x8xbf16> -> vector<8x8xbf16>
    %cst_31 = arith.constant dense<0.000000e+00> : vector<8x8xf32>
    %94 = tpu.matmul %91, %93, %cst_31 {dimension_numbers = #tpu.dot_dimension_numbers<[1], [0], [0], [1], [0, 0, 1, 1], [], []>} : vector<8x8xbf16>, vector<8x8xbf16>, vector<8x8xf32> -> vector<8x8xf32>
    %cst_32 = arith.constant dense<0xFF800000> : vector<8xf32>
    %95 = vector.multi_reduction <maximumf>, %94, %cst_32 [1] : vector<8x8xf32> to vector<8xf32>
    %96 = vector.shape_cast %95 : vector<8xf32> to vector<8x1xf32>
    %97 = vector.broadcast %96 : vector<8x1xf32> to vector<8x8xf32>
    %98 = arith.subf %94, %97 : vector<8x8xf32>
    %99 = math.exp %98 : vector<8x8xf32>
    %cst_33 = arith.constant dense<0.000000e+00> : vector<8xf32>
    %100 = vector.multi_reduction <add>, %99, %cst_33 [1] : vector<8x8xf32> to vector<8xf32>
    %101 = vector.shape_cast %100 : vector<8xf32> to vector<8x1xf32>
    %102 = tpu.reciprocal %101 {approx = true} : vector<8x1xf32> -> vector<8x1xf32>
    %103 = vector.broadcast %102 : vector<8x1xf32> to vector<8x8xf32>
    %104 = arith.mulf %99, %103 : vector<8x8xf32>
    %105 = arith.truncf %104 : vector<8x8xf32> to vector<8x8xbf16>
    %106 = arith.truncf %90 : vector<8x8xf32> to vector<8x8xbf16>
    %cst_34 = arith.constant dense<0.000000e+00> : vector<8x8xf32>
    %107 = tpu.matmul %105, %106, %cst_34 {dimension_numbers = #tpu.dot_dimension_numbers<[1], [0], [0], [1], [0, 0, 1, 1], [], []>} : vector<8x8xbf16>, vector<8x8xbf16>, vector<8x8xf32> -> vector<8x8xf32>
    %108 = arith.truncf %107 : vector<8x8xf32> to vector<8x8xbf16>
    %c24 = arith.constant 24 : index
    %c0_35 = arith.constant 0 : index
    %109 = vector.load %arg3[%c24, %c0_35] : memref<32x32xbf16, #tpu.memory_space<vmem>>, vector<8x32xbf16>
    %cst_36 = arith.constant dense<0.000000e+00> : vector<8x32xf32>
    %110 = tpu.matmul %108, %109, %cst_36 {dimension_numbers = #tpu.dot_dimension_numbers<[1], [0], [0], [1], [0, 0, 1, 1], [], []>} : vector<8x8xbf16>, vector<8x32xbf16>, vector<8x32xf32> -> vector<8x32xf32>
    %111 = arith.addf %85, %110 : vector<8x32xf32>
    %c0_37 = arith.constant 0 : index
    %c0_38 = arith.constant 0 : index
    %112 = vector.load %arg4[%c0_37, %c0_38] : memref<1x32xf32, #tpu.memory_space<vmem>>, vector<1x32xf32>
    %113 = vector.shape_cast %112 : vector<1x32xf32> to vector<32xf32>
    %114 = vector.shape_cast %113 : vector<32xf32> to vector<1x32xf32>
    %115 = vector.broadcast %114 : vector<1x32xf32> to vector<8x32xf32>
    %116 = arith.addf %111, %115 : vector<8x32xf32>
    %117 = arith.addf %1, %116 : vector<8x32xf32>
    %cst_39 = arith.constant dense<0.000000e+00> : vector<8xf32>
    %118 = vector.multi_reduction <add>, %117, %cst_39 [1] : vector<8x32xf32> to vector<8xf32>
    %119 = vector.shape_cast %118 : vector<8xf32> to vector<8x1xf32>
    %cst_40 = arith.constant 3.200000e+01 : f32
    %120 = vector.broadcast %cst_40 : f32 to vector<8x1xf32>
    %121 = arith.divf %119, %120 : vector<8x1xf32>
    %122 = vector.broadcast %121 : vector<8x1xf32> to vector<8x32xf32>
    %123 = arith.subf %117, %122 : vector<8x32xf32>
    %124 = arith.mulf %123, %123 : vector<8x32xf32>
    %cst_41 = arith.constant dense<0.000000e+00> : vector<8xf32>
    %125 = vector.multi_reduction <add>, %124, %cst_41 [1] : vector<8x32xf32> to vector<8xf32>
    %126 = vector.shape_cast %125 : vector<8xf32> to vector<8x1xf32>
    %cst_42 = arith.constant 3.200000e+01 : f32
    %127 = vector.broadcast %cst_42 : f32 to vector<8x1xf32>
    %128 = arith.divf %126, %127 : vector<8x1xf32>
    %129 = vector.broadcast %121 : vector<8x1xf32> to vector<8x32xf32>
    %130 = arith.subf %117, %129 : vector<8x32xf32>
    %cst_43 = arith.constant 9.99999974E-6 : f32
    %131 = vector.broadcast %cst_43 : f32 to vector<8x1xf32>
    %132 = arith.addf %128, %131 : vector<8x1xf32>
    %133 = math.rsqrt %132 : vector<8x1xf32>
    %134 = vector.broadcast %133 : vector<8x1xf32> to vector<8x32xf32>
    %135 = arith.mulf %130, %134 : vector<8x32xf32>
    %c0_44 = arith.constant 0 : index
    %c0_45 = arith.constant 0 : index
    %136 = vector.load %arg5[%c0_44, %c0_45] : memref<1x32xf32, #tpu.memory_space<vmem>>, vector<1x32xf32>
    %137 = vector.shape_cast %136 : vector<1x32xf32> to vector<32xf32>
    %138 = vector.shape_cast %137 : vector<32xf32> to vector<1x32xf32>
    %139 = vector.broadcast %138 : vector<1x32xf32> to vector<8x32xf32>
    %140 = arith.mulf %135, %139 : vector<8x32xf32>
    %c0_46 = arith.constant 0 : index
    %c0_47 = arith.constant 0 : index
    %141 = vector.load %arg6[%c0_46, %c0_47] : memref<1x32xf32, #tpu.memory_space<vmem>>, vector<1x32xf32>
    %142 = vector.shape_cast %141 : vector<1x32xf32> to vector<32xf32>
    %143 = vector.shape_cast %142 : vector<32xf32> to vector<1x32xf32>
    %144 = vector.broadcast %143 : vector<1x32xf32> to vector<8x32xf32>
    %145 = arith.addf %140, %144 : vector<8x32xf32>
    %146 = arith.truncf %145 : vector<8x32xf32> to vector<8x32xbf16>
    %c0_48 = arith.constant 0 : index
    %c0_49 = arith.constant 0 : index
    %147 = vector.load %arg7[%c0_48, %c0_49] : memref<32x2048xbf16, #tpu.memory_space<vmem>>, vector<32x2048xbf16>
    %cst_50 = arith.constant dense<0.000000e+00> : vector<8x2048xf32>
    %148 = tpu.matmul %146, %147, %cst_50 {dimension_numbers = #tpu.dot_dimension_numbers<[1], [0], [0], [1], [0, 0, 1, 1], [], []>} : vector<8x32xbf16>, vector<32x2048xbf16>, vector<8x2048xf32> -> vector<8x2048xf32>
    %c0_51 = arith.constant 0 : index
    %c0_52 = arith.constant 0 : index
    %149 = vector.load %arg8[%c0_51, %c0_52] : memref<1x2048xf32, #tpu.memory_space<vmem>>, vector<1x2048xf32>
    %150 = vector.shape_cast %149 : vector<1x2048xf32> to vector<2048xf32>
    %151 = vector.shape_cast %150 : vector<2048xf32> to vector<1x2048xf32>
    %152 = vector.broadcast %151 : vector<1x2048xf32> to vector<8x2048xf32>
    %153 = arith.addf %148, %152 : vector<8x2048xf32>
    %cst_53 = arith.constant 0.000000e+00 : f32
    %154 = vector.broadcast %cst_53 : f32 to vector<8x2048xf32>
    %155 = arith.maximumf %153, %154 : vector<8x2048xf32>
    %156 = arith.truncf %155 : vector<8x2048xf32> to vector<8x2048xbf16>
    %c0_54 = arith.constant 0 : index
    %c0_55 = arith.constant 0 : index
    %157 = vector.load %arg9[%c0_54, %c0_55] : memref<2048x32xbf16, #tpu.memory_space<vmem>>, vector<2048x32xbf16>
    %cst_56 = arith.constant dense<0.000000e+00> : vector<8x32xf32>
    %158 = tpu.matmul %156, %157, %cst_56 {dimension_numbers = #tpu.dot_dimension_numbers<[1], [0], [0], [1], [0, 0, 1, 1], [], []>} : vector<8x2048xbf16>, vector<2048x32xbf16>, vector<8x32xf32> -> vector<8x32xf32>
    %c0_57 = arith.constant 0 : index
    %c0_58 = arith.constant 0 : index
    %159 = vector.load %arg10[%c0_57, %c0_58] : memref<1x32xf32, #tpu.memory_space<vmem>>, vector<1x32xf32>
    %160 = vector.shape_cast %159 : vector<1x32xf32> to vector<32xf32>
    %161 = vector.shape_cast %160 : vector<32xf32> to vector<1x32xf32>
    %162 = vector.broadcast %161 : vector<1x32xf32> to vector<8x32xf32>
    %163 = arith.addf %158, %162 : vector<8x32xf32>
    %164 = arith.addf %145, %163 : vector<8x32xf32>
    %cst_59 = arith.constant dense<0.000000e+00> : vector<8xf32>
    %165 = vector.multi_reduction <add>, %164, %cst_59 [1] : vector<8x32xf32> to vector<8xf32>
    %166 = vector.shape_cast %165 : vector<8xf32> to vector<8x1xf32>
    %cst_60 = arith.constant 3.200000e+01 : f32
    %167 = vector.broadcast %cst_60 : f32 to vector<8x1xf32>
    %168 = arith.divf %166, %167 : vector<8x1xf32>
    %169 = vector.broadcast %168 : vector<8x1xf32> to vector<8x32xf32>
    %170 = arith.subf %164, %169 : vector<8x32xf32>
    %171 = arith.mulf %170, %170 : vector<8x32xf32>
    %cst_61 = arith.constant dense<0.000000e+00> : vector<8xf32>
    %172 = vector.multi_reduction <add>, %171, %cst_61 [1] : vector<8x32xf32> to vector<8xf32>
    %173 = vector.shape_cast %172 : vector<8xf32> to vector<8x1xf32>
    %cst_62 = arith.constant 3.200000e+01 : f32
    %174 = vector.broadcast %cst_62 : f32 to vector<8x1xf32>
    %175 = arith.divf %173, %174 : vector<8x1xf32>
    %176 = vector.broadcast %168 : vector<8x1xf32> to vector<8x32xf32>
    %177 = arith.subf %164, %176 : vector<8x32xf32>
    %cst_63 = arith.constant 9.99999974E-6 : f32
    %178 = vector.broadcast %cst_63 : f32 to vector<8x1xf32>
    %179 = arith.addf %175, %178 : vector<8x1xf32>
    %180 = math.rsqrt %179 : vector<8x1xf32>
    %181 = vector.broadcast %180 : vector<8x1xf32> to vector<8x32xf32>
    %182 = arith.mulf %177, %181 : vector<8x32xf32>
    %c0_64 = arith.constant 0 : index
    %c0_65 = arith.constant 0 : index
    %183 = vector.load %arg11[%c0_64, %c0_65] : memref<1x32xf32, #tpu.memory_space<vmem>>, vector<1x32xf32>
    %184 = vector.shape_cast %183 : vector<1x32xf32> to vector<32xf32>
    %185 = vector.shape_cast %184 : vector<32xf32> to vector<1x32xf32>
    %186 = vector.broadcast %185 : vector<1x32xf32> to vector<8x32xf32>
    %187 = arith.mulf %182, %186 : vector<8x32xf32>
    %c0_66 = arith.constant 0 : index
    %c0_67 = arith.constant 0 : index
    %188 = vector.load %arg12[%c0_66, %c0_67] : memref<1x32xf32, #tpu.memory_space<vmem>>, vector<1x32xf32>
    %189 = vector.shape_cast %188 : vector<1x32xf32> to vector<32xf32>
    %190 = vector.shape_cast %189 : vector<32xf32> to vector<1x32xf32>
    %191 = vector.broadcast %190 : vector<1x32xf32> to vector<8x32xf32>
    %192 = arith.addf %187, %191 : vector<8x32xf32>
    %c0_68 = arith.constant 0 : index
    %c0_69 = arith.constant 0 : index
    %c0_70 = arith.constant 0 : index
    %193 = vector.load %arg13[%c0_68, %c0_69, %c0_70] : memref<1x8x32xf32, #tpu.memory_space<vmem>>, vector<1x8x32xf32>
    %194 = vector.shape_cast %193 : vector<1x8x32xf32> to vector<8x32xf32>
    %195 = vector.shape_cast %192 : vector<8x32xf32> to vector<1x8x32xf32>
    tpu.vector_store %arg13[%c0_68, %c0_69, %c0_70], %195 {strides = array<i32>} : memref<1x8x32xf32, #tpu.memory_space<vmem>>, vector<1x8x32xf32>,
    return
  }
  func.func @transform_0(%arg0: i32) -> (i32, i32, i32) {
    %c0_i32 = arith.constant 0 : i32
    %c0_i32_0 = arith.constant 0 : i32
    %c0_i32_1 = arith.constant 0 : i32
    return %arg0, %c0_i32, %c0_i32_0 : i32, i32, i32
  }
  func.func @transform_1(%arg0: i32) -> (i32, i32) {
    %c0_i32 = arith.constant 0 : i32
    %c0_i32_0 = arith.constant 0 : i32
    %c0_i32_1 = arith.constant 0 : i32
    return %c0_i32, %c0_i32_0 : i32, i32
  }
  func.func @transform_2(%arg0: i32) -> (i32, i32) {
    %c0_i32 = arith.constant 0 : i32
    %c0_i32_0 = arith.constant 0 : i32
    %c0_i32_1 = arith.constant 0 : i32
    return %c0_i32, %c0_i32_0 : i32, i32
  }
  func.func @transform_3(%arg0: i32) -> (i32, i32) {
    %c0_i32 = arith.constant 0 : i32
    %c0_i32_0 = arith.constant 0 : i32
    %c0_i32_1 = arith.constant 0 : i32
    return %c0_i32, %c0_i32_0 : i32, i32
  }
  func.func @transform_4(%arg0: i32) -> (i32, i32) {
    %c0_i32 = arith.constant 0 : i32
    %c0_i32_0 = arith.constant 0 : i32
    %c0_i32_1 = arith.constant 0 : i32
    return %c0_i32, %c0_i32_0 : i32, i32
  }
  func.func @transform_5(%arg0: i32) -> (i32, i32) {
    %c0_i32 = arith.constant 0 : i32
    %c0_i32_0 = arith.constant 0 : i32
    %c0_i32_1 = arith.constant 0 : i32
    return %c0_i32, %c0_i32_0 : i32, i32
  }
  func.func @transform_6(%arg0: i32) -> (i32, i32) {
    %c0_i32 = arith.constant 0 : i32
    %c0_i32_0 = arith.constant 0 : i32
    %c0_i32_1 = arith.constant 0 : i32
    return %c0_i32, %c0_i32_0 : i32, i32
  }
  func.func @transform_7(%arg0: i32) -> (i32, i32) {
    %c0_i32 = arith.constant 0 : i32
    %c0_i32_0 = arith.constant 0 : i32
    %c0_i32_1 = arith.constant 0 : i32
    return %c0_i32, %c0_i32_0 : i32, i32
  }
  func.func @transform_8(%arg0: i32) -> (i32, i32) {
    %c0_i32 = arith.constant 0 : i32
    %c0_i32_0 = arith.constant 0 : i32
    %c0_i32_1 = arith.constant 0 : i32
    return %c0_i32, %c0_i32_0 : i32, i32
  }
  func.func @transform_9(%arg0: i32) -> (i32, i32) {
    %c0_i32 = arith.constant 0 : i32
    %c0_i32_0 = arith.constant 0 : i32
    %c0_i32_1 = arith.constant 0 : i32
    return %c0_i32, %c0_i32_0 : i32, i32
  }
  func.func @transform_10(%arg0: i32) -> (i32, i32) {
    %c0_i32 = arith.constant 0 : i32
    %c0_i32_0 = arith.constant 0 : i32
    %c0_i32_1 = arith.constant 0 : i32
    return %c0_i32, %c0_i32_0 : i32, i32
  }
  func.func @transform_11(%arg0: i32) -> (i32, i32) {
    %c0_i32 = arith.constant 0 : i32
    %c0_i32_0 = arith.constant 0 : i32
    %c0_i32_1 = arith.constant 0 : i32
    return %c0_i32, %c0_i32_0 : i32, i32
  }
  func.func @transform_12(%arg0: i32) -> (i32, i32, i32) {
    %c0_i32 = arith.constant 0 : i32
    %c0_i32_0 = arith.constant 0 : i32
    %c0_i32_1 = arith.constant 0 : i32
    return %arg0, %c0_i32, %c0_i32_0 : i32, i32, i32
  }
}

</mosaic_0001>

<bundles_post_ra>
// kernel: tpu_custom_call.1
= control target key start
LH: loop header
LB: loop body
LE: loop exit
PB: predicated region body
PF: predicated region fallthrough
CT: control target
= control target key end

     0   :  { %s4906_s0 = inlined_call_operand.vmem [shape: f32[2,8,32], index: 0, kind: input, shape index: {}]   ;;  %s4907_s1 = inlined_call_operand.vmem [shape: bf16[32,96], index: 1, kind: input, shape index: {}]   ;;  %s4908_s2 = inlined_call_operand.vmem [shape: bf16[32,32], index: 2, kind: input, shape index: {}]   ;;  %s4909_s3 = inlined_call_operand.vmem [shape: f32[1,32], index: 3, kind: input, shape index: {}]   ;;  %s4910_s4 = inlined_call_operand.vmem [shape: f32[1,32], index: 4, kind: input, shape index: {}]   ;;  %s4911_s5 = inlined_call_operand.vmem [shape: f32[1,32], index: 5, kind: input, shape index: {}]   ;;  %s4912_s6 = inlined_call_operand.vmem [shape: bf16[32,2048], index: 6, kind: input, shape index: {}]   ;;  %s4913_s7 = inlined_call_operand.vmem [shape: f32[1,2048], index: 7, kind: input, shape index: {}]   ;;  %s4914_s8 = inlined_call_operand.vmem [shape: bf16[2048,32], index: 8, kind: input, shape index: {}]   ;;  %s4915_s9 = inlined_call_operand.vmem [shape: f32[1,32], index: 9, kind: input, shape index: {}]   ;;  %s4916_s10 = inlined_call_operand.vmem [shape: f32[1,32], index: 10, kind: input, shape index: {}]   ;;  %s4917_s11 = inlined_call_operand.vmem [shape: f32[1,32], index: 11, kind: input, shape index: {}]   ;;  %s4918_s12 = inlined_call_operand.hbm [shape: f32[2,8,32], index: 12, kind: output, shape index: {}]  }
   0x1   :  { %4919 = sst [smem:[#allocation5_spill]] %s4906_s0 }
   0x2   :  { %4920 = sst [smem:[#allocation6_spill]] %s4907_s1 }
   0x3   :  { %4921 = sst [smem:[#allocation7_spill]] %s4908_s2 }
   0x4   :  { %17 = vsyncpa [#allocation3], 0 }
   0x5   :  { %19 = vsyncpa [#allocation3 + $0x1], 0  ;;  %s4074_s21 = smov 0   ;;  %s4076_s22 = smov 0  }
   0x6   :  { %s4078_s23 = smov 0   ;;  %s4080_s24 = smov 0  }
   0x7 LB: > { %s4095_s25 = sadd.s32 4294967295, %s3992_s24   ;;  %s3245_s26 = sadd.s32 4294967294, %s3992_s24   ;;  %s3992_s24 = sphi %s4080_s24, %s4930_s24   ;;  %s3988_s23 = sphi %s4078_s23, %s4929_s23   ;;  %s3984_s22 = sphi %s4076_s22, %s4928_s22   ;;  %s3980_s21 = sphi %s4074_s21, %s4927_s21  }
   0x8   : > { %s4099_s27 = sadd.s32 1, %s3992_s24   ;;  %s289_s28 = sadd.s32 1, %s3988_s23 }
   0x9   : > { %s286_s29 = ssub.s32 %s3992_s24, %s4099_s27  ;;  %p299_p0 = scmp.ne.s32.totalorder %s3988_s23, %s3984_s22 }
   0xa   : > { %p287_p1 = scmp.eq.s32.totalorder %s286_s29, 0  ;;  %p300_p2 = scmp.eq.s32.totalorder %s4095_s25, 1 }
   0xb   : > { %p305_p3 = scmp.ne.s32.totalorder %s3984_s22, %s3980_s21  ;;  %p306_p4 = scmp.eq.s32.totalorder %s3245_s26, 1 }
   0xc   : > { %s4110_s30 = scalar_select %p287_p1, %s3988_s23, %s289_s28  }
   0xd   : > { %p4112_p5 = por %p300_p2, %p299_p0  ;;  %p4116_p6 = por %p306_p4, %p305_p3 }
   0xe   : > { %p3248_p7 = scmp.ge.s32.totalorder %s3992_s24, 1  ;;  %p364_p8 = scmp.lt.s32.totalorder %s3992_s24, 3 }
  0x10   : > { %p365_p9 = pnand %p3248_p7, %p364_p8 }
  0x11   : > { %s4924_s1 = sld [smem:[#allocation6_spill]] (!%p365_p9)  ;;  %v3994_v1 = vmov (!%p365_p9), 0.0   ;;  %vm3995_vm0 = vmmov (!%p365_p9), 0   ;;  %p405_p10 = scmp.lt.s32.totalorder (!%p365_p9), %s4095_s25, 1  ;;  %vm428_vm1 = vcmask (!%p365_p9), 261120   ;;  %vm478_vm2 = vcmask (!%p365_p9), 64512  }
  0x12   : > { %368 = sbr.rel (%p365_p9) target bundleno = 3802 (0xeda), region = 68  ;;  %3647 = vmatprep.subr.bf16.mxu0 (!%p365_p9), %v3994_v1  ;;  %3655 = vmatprep.subr.bf16.mxu1 (!%p365_p9), %v3994_v1  ;;  %s4925_s0 = sld [smem:[#allocation5_spill]] (!%p365_p9)  ;;  %vm542_vm3 = vcmask (!%p365_p9), 1043456  }
  0x13   : > { %3651 = vmatprep.mubr.msk.bf16.mxu0 (!%p365_p9), %vm3995_vm0, %v3994_v1  ;;  %3657 = vmatprep.mubr.msk.bf16.mxu1 (!%p365_p9), %vm3995_vm0, %v3994_v1  ;;  %s3996_s15 = smov (!%p365_p9), 96   ;;  %s3997_s16 = smov (!%p365_p9), 120  }
  0x14   : > { %s3998_s17 = smov (!%p365_p9), 88   ;;  %s3999_s18 = smov (!%p365_p9), 64  }
  0x15   : > { %s4002_s26 = smov (!%p365_p9), 80   ;;  %s4926_s2 = sld [smem:[#allocation7_spill]] (!%p365_p9) }
  0x16   : > { %s4006_s28 = smov (!%p365_p9), 40  }
  0x17   : > { %v3780_v0 = vld [vmem:[%s4924_s1] sm:$0xff] (!%p365_p9)   ;;  %v3781_v2 = vld [vmem:[%s4924_s1 + $0x8] sm:$0xff] (!%p365_p9)  }
  0x18   : > { %3648 = vmatpush3.bf16.msra.mxu0 (!%p365_p9), %v3780_v0 }
  0x19   : > { %3649 = vmatprep.subr.bf16.mxu0 %v3994_v1  ;;  %s406_s19 = scalar_select %p405_p10, %s4095_s25, 1 }
  0x1b   : > { %s3250_s20 = sshll.u32 %s406_s19, 3  ;;  %s4000_s19 = smov 56   ;;  %v587_v49 = vld [vmem:[%s4926_s2] sm:$0xf]  ;;  %v700_v51 = vld [vmem:[%s4926_s2 + $0x4] sm:$0xf] }
  0x1c   : > { %3650 = vmatpush3.bf16.msra.mxu0 %v3781_v2  ;;  %s408_s29 = scalar_lea.vmem %s4925_s0, %s3250_s20  ;;  %s4001_s20 = smov 112   ;;  %v751_v50 = vsel %vm542_vm3, %v587_v49, 0  ;;  %v705_v52 = vsel %vm542_vm3, %v700_v51, 0  ;;  %v1063_v51 = vld [vmem:[%s4926_s2 + $0xc] sm:$0xf] }
  0x1d   : > { %3661 = vmatprep.subr.bf16.mxu0 %v3994_v1  ;;  %v4141_v3 = vld [vmem:[%s408_s29] sm:$0xff]  ;;  %s402_s0 = sand.u32 1, %s3984_s22  }
  0x1e   : > { %v411_v4 = vpack.c.bf16 %v4141_v3, %v4141_v3 }
  0x20   : > { %3652 = vmatmul.mubr.msk.bf16.vlgmr.msra.gmra.mrb[0].mxu0 %vm428_vm1, %v411_v4 }
  0x21   : > { %3663 = vmatprep.mubr.msk.bf16.mxu0 %vm3995_vm0, %v3994_v1 }
  0xf3   : > { %v466_v5 = vpop.f32.mrb[0].mxu0 }
  0xf4   : > { %v472_v6 = vmul.f32 0.35355338, %v466_v5  ;;  %v4148_v7 = vpack.c.bf16 %v466_v5, %v466_v5  ;;  %v3653_v8 = vpop.f32.mrb[1].mxu0 }
  0xf5   : > { %v469_v9 = vpop.f32.mrb[2].mxu0 }
  0xf6   : > { %v4150_v10 = vpack.c.bf16 %v472_v6, %v472_v6  ;;  %476 = vrot.lane.b32.xlu0 %v4148_v7, %s3996_s15  ;;  %v3654_v11 = vpop.f32.mrb[3].mxu0 }
  0xf8   : > { %589 = vrot.lane.b32.xlu1 %v4150_v10, %s3997_s16 }
  0xfa   : > { %591 = vrot.lane.b32.xlu0 %v4148_v7, %s3998_s17  ;;  %s4003_s17 = smov 72  }
 0x168   : > { %v477_v12 = vpop.permute.xlu0 %476 }
 0x169   : > { %v483_v13 = vsel %vm478_vm2, %v477_v12, 0 }
 0x16a   : > { %3656 = vmatpush3.bf16.xpose.msra.mxu1 %v483_v13  ;;  %v590_v16 = vpop.permute.xlu1 %589 }
 0x16b   : > { %3667 = vmatprep.subr.bf16.mxu1 %v3994_v1 }
 0x16c   : > { %v592_v14 = vpop.permute.xlu0 %591 }
 0x16d   : > { %v597_v15 = vsel %vm478_vm2, %v592_v14, 0 }
 0x171   : > { %3658 = vmatmul.mubr.msk.bf16.vlgmr.msra.gmra.mrb[0].mxu1 %vm478_vm2, %v4150_v10 }
 0x172   : > { %3668 = vmatpush3.bf16.xpose.msra.mxu1 %v597_v15  ;;  %3669 = vmatprep.mubr.msk.bf16.mxu1 %vm3995_vm0, %v3994_v1 }
 0x173   : > { %3679 = vmatprep.subr.bf16.mxu1 %v3994_v1 }
 0x179   : > { %3670 = vmatmul.mubr.msk.bf16.vlgmr.msra.gmra.mrb[4].mxu1 %vm478_vm2, %v590_v16 }
 0x17a   : > { %3681 = vmatprep.mubr.msk.bf16.mxu1 %vm3995_vm0, %v3994_v1  ;;  %3680 = vmatpush3.bf16.msra.mxu1 %v705_v52  ;;  %v1068_v52 = vsel %vm542_vm3, %v1063_v51, 0  ;;  %v1177_v51 = vld [vmem:[%s4912_s6 + $0xd0] sm:$0xff] }
 0x17b   : > { %3691 = vmatprep.subr.bf16.mxu1 %v3994_v1 }
 0x244   : > { %v519_v17 = vpop.f32.mrb[0].mxu1 }
 0x245   : > { %v3659_v18 = vpop.f32.mrb[1].mxu1  ;;  %v525_v19 = vsel %vm478_vm2, %v519_v17, -inf }
 0x246   : > { %526 = vmax.xlane.f32.xlu1 %v525_v19  ;;  %v522_v20 = vpop.f32.mrb[2].mxu1 }
 0x247   : > { %v3660_v21 = vpop.f32.mrb[3].mxu1 }
 0x24c   : > { %v633_v22 = vpop.f32.mrb[4].mxu1 }
 0x24d   : > { %v3671_v23 = vpop.f32.mrb[5].mxu1  ;;  %v639_v24 = vsel %vm478_vm2, %v633_v22, -inf }
 0x24e   : > { %640 = vmax.xlane.f32.xlu0 %v639_v24  ;;  %v636_v25 = vpop.f32.mrb[6].mxu1 }
 0x24f   : > { %v3672_v26 = vpop.f32.mrb[7].mxu1 }
 0x2d3   : > { %v527_v27 = vpop.xlane.xlu1 %526 }
 0x2d4   : > { %v528_v28 = vsub.f32 %v519_v17, %v527_v27 }
 0x2d6   : > { %v529_v29 = vmul.f32 1.442695, %v528_v28 }
 0x2d8   : > { %3910 = vpow2.f32 %v529_v29 }
 0x2db   : > { %v641_v30 = vpop.xlane.xlu0 %640 }
 0x2dc   : > { %v642_v31 = vsub.f32 %v633_v22, %v641_v30 }
 0x2de   : > { %v643_v32 = vmul.f32 1.442695, %v642_v31 }
 0x2e0   : > { %3912 = vpow2.f32 %v643_v32 }
 0x2e2   : > { %v3911_v33 = vpop.eup %3910 }
 0x2e3   : > { %v531_v34 = vsel %vm478_vm2, %v3911_v33, 0.0 }
 0x2e4   : > { %532 = vadd.xlane.f32.xlu0 %v531_v34 }
 0x2ea   : > { %v3913_v35 = vpop.eup %3912 }
 0x2eb   : > { %v645_v36 = vsel %vm478_vm2, %v3913_v35, 0.0 }
 0x2ec   : > { %646 = vadd.xlane.f32.xlu1 %v645_v36 }
 0x2fa   : > { %537 = vrot.lane.b32.xlu0 %v4148_v7, %s3999_s18  ;;  %s4004_s18 = smov 104  }
 0x2fd   : > { %651 = vrot.lane.b32.xlu1 %v4148_v7, %s4000_s19  ;;  %s4005_s19 = smov 48  }
 0x2fe   : > { %793 = vrot.lane.b32.xlu0 %v4150_v10, %s4001_s20 }
 0x301   : > { %795 = vrot.lane.b32.xlu1 %v4148_v7, %s4002_s26  ;;  %s3249_s26 = sshll.u32 %s402_s0, 3 }
 0x371   : > { %v533_v37 = vpop.xlane.xlu0 %532 }
 0x372   : > { %3914 = vrcp.f32 %v533_v37 }
 0x375   : > { %v538_v38 = vpop.permute.xlu0 %537 }
 0x376   : > { %v544_v39 = vsel %vm542_vm3, %v538_v38, 0 }
 0x377   : > { %3662 = vmatpush3.bf16.msra.mxu0 %v544_v39 }
 0x378   : > { %3673 = vmatprep.subr.bf16.mxu0 %v3994_v1 }
 0x379   : > { %v647_v40 = vpop.xlane.xlu1 %646  ;;  %v794_v2 = vpop.permute.xlu0 %793 }
 0x37a   : > { %3916 = vrcp.f32 %v647_v40 }
 0x37c   : > { %v3915_v41 = vpop.eup %3914 }
 0x37d   : > { %v535_v42 = vmul.f32 %v3915_v41, %v3911_v33  ;;  %v652_v43 = vpop.permute.xlu1 %651  ;;  %v904_v33 = vld [vmem:[%s4926_s2 + $0x8] sm:$0xf] }
 0x37e   : > { %v657_v45 = vsel %vm542_vm3, %v652_v43, 0  ;;  %v909_v34 = vsel %vm542_vm3, %v904_v33, 0 }
 0x37f   : > { %v536_v44 = vpack.c.bf16 %v535_v42, %v535_v42 }
 0x381   : > { %3664 = vmatmul.mubr.msk.bf16.vlgmr.msra.gmra.mrb[4].mxu0 %vm478_vm2, %v536_v44  ;;  %v796_v58 = vpop.permute.xlu1 %795 }
 0x382   : > { %3674 = vmatpush3.bf16.msra.mxu0 %v657_v45  ;;  %3675 = vmatprep.mubr.msk.bf16.mxu0 %vm3995_vm0, %v3994_v1  ;;  %v801_v63 = vsel %vm478_vm2, %v796_v58, 0 }
 0x383   : > { %3685 = vmatprep.subr.bf16.mxu0 %v3994_v1 }
 0x384   : > { %v3917_v46 = vpop.eup %3916 }
 0x385   : > { %v649_v47 = vmul.f32 %v3917_v46, %v3913_v35 }
 0x387   : > { %v650_v48 = vpack.c.bf16 %v649_v47, %v649_v47 }
 0x389   : > { %3676 = vmatmul.mubr.msk.bf16.vlgmr.msra.gmra.mrb[8].mxu0 %vm478_vm2, %v650_v48 }
 0x38a   : > { %3687 = vmatprep.mubr.msk.bf16.mxu0 %vm3995_vm0, %v3994_v1  ;;  %3686 = vmatpush3.bf16.msra.mxu0 %v751_v50 }
 0x38b   : > { %3697 = vmatprep.subr.bf16.mxu0 %v3994_v1 }
 0x454   : > { %v580_v53 = vpop.f32.mrb[4].mxu0 }
 0x455   : > { %v586_v54 = vpack.c.bf16 %v580_v53, %v580_v53  ;;  %v3665_v55 = vpop.f32.mrb[5].mxu0 }
 0x456   : > { %v583_v56 = vpop.f32.mrb[6].mxu0 }
 0x457   : > { %v3666_v57 = vpop.f32.mrb[7].mxu0  ;;  %3688 = vmatmul.mubr.msk.bf16.vlgmr.msra.gmra.mrb[12].mxu0 %vm478_vm2, %v586_v54 }
 0x458   : > { %3699 = vmatprep.mubr.msk.bf16.mxu0 %vm3995_vm0, %v3994_v1 }
 0x45c   : > { %v693_v59 = vpop.f32.mrb[8].mxu0 }
 0x45d   : > { %v699_v60 = vpack.c.bf16 %v693_v59, %v693_v59  ;;  %v3677_v61 = vpop.f32.mrb[9].mxu0 }
 0x45e   : > { %v696_v62 = vpop.f32.mrb[10].mxu0 }
 0x45f   : > { %v3678_v0 = vpop.f32.mrb[11].mxu0  ;;  %3682 = vmatmul.mubr.msk.bf16.vlgmr.msra.gmra.mrb[8].mxu1 %vm478_vm2, %v699_v60 }
 0x460   : > { %3692 = vmatpush3.bf16.xpose.msra.mxu1 %v801_v63  ;;  %3693 = vmatprep.mubr.msk.bf16.mxu1 %vm3995_vm0, %v3994_v1 }
 0x461   : > { %3703 = vmatprep.subr.bf16.mxu1 %v3994_v1 }
 0x467   : > { %3694 = vmatmul.mubr.msk.bf16.vlgmr.msra.gmra.mrb[12].mxu1 %vm478_vm2, %v794_v2 }
 0x468   : > { %3705 = vmatprep.mubr.msk.bf16.mxu1 %vm3995_vm0, %v3994_v1  ;;  %3704 = vmatpush3.bf16.msra.mxu1 %v909_v34  ;;  %v1153_v34 = vld [vmem:[%s4912_s6 + $0x10] sm:$0xff] }
 0x469   : > { %3715 = vmatprep.subr.bf16.mxu1 %v3994_v1 }
 0x52a   : > { %v787_v4 = vpop.f32.mrb[12].mxu0 }
 0x52b   : > { %v3689_v5 = vpop.f32.mrb[13].mxu0 }
 0x52c   : > { %v790_v6 = vpop.f32.mrb[14].mxu0  ;;  %v3266_v5 = vld [vmem:[%s4909_s3] ss:$0 sm:$0xff] }
 0x52d   : > { %v3690_v8 = vpop.f32.mrb[15].mxu0 }
 0x532   : > { %v741_v9 = vpop.f32.mrb[8].mxu1 }
 0x533   : > { %v4205_v11 = vadd.f32 %v787_v4, %v741_v9  ;;  %v3683_v12 = vpop.f32.mrb[9].mxu1 }
 0x534   : > { %v744_v13 = vpop.f32.mrb[10].mxu1 }
 0x535   : > { %v3684_v14 = vpop.f32.mrb[11].mxu1 }
 0x53a   : > { %v837_v15 = vpop.f32.mrb[12].mxu1 }
 0x53b   : > { %v3695_v16 = vpop.f32.mrb[13].mxu1  ;;  %v843_v17 = vsel %vm478_vm2, %v837_v15, -inf }
 0x53c   : > { %844 = vmax.xlane.f32.xlu1 %v843_v17  ;;  %v840_v18 = vpop.f32.mrb[14].mxu1 }
 0x53d   : > { %v3696_v19 = vpop.f32.mrb[15].mxu1 }
 0x54d   : > { %954 = vrot.lane.b32.xlu1 %v4148_v7, %s4003_s17  ;;  %s3441_s17 = sshll.u32 %s4095_s25, 7  ;;  %s4008_s25 = smov [#allocation2]  }
 0x54e   : > { %s4863_s2 = scalar_lea.hbm %s4918_s12, %s3441_s17 }
 0x551   : > { %952 = vrot.lane.b32.xlu1 %v4150_v10, %s4004_s18  ;;  %s404_s18 = scalar_lea.vmem [#allocation2], %s3249_s26  ;;  %s3934_s26 = sshll.u32 %s4008_s25, 4  ;;  %s3935_s26 = int_to_ptr.vmem [resolvable:$false] %s3934_s26 }
 0x552   : > { %s3936_s15 = scalar_lea.vmem %s3935_s26, 256 }
 0x5c9   : > { %v845_v20 = vpop.xlane.xlu1 %844 }
 0x5ca   : > { %v846_v21 = vsub.f32 %v837_v15, %v845_v20  ;;  %v1151_v20 = vld [vmem:[%s4912_s6] sm:$0xff] }
 0x5cc   : > { %v847_v22 = vmul.f32 1.442695, %v846_v21  ;;  %v1159_v21 = vld [vmem:[%s4912_s6 + $0x40] sm:$0xff] }
 0x5cd   : > { %v955_v29 = vpop.permute.xlu1 %954 }
 0x5ce   : > { %3918 = vpow2.f32 %v847_v22  ;;  %v960_v31 = vsel %vm478_vm2, %v955_v29, 0  ;;  %v3270_v22 = vcombine.high %v1151_v20, %v1159_v21 }
 0x5d1   : > { %v953_v32 = vpop.permute.xlu1 %952 }
 0x5d8   : > { %v3919_v23 = vpop.eup %3918 }
 0x5d9   : > { %v849_v24 = vsel %vm478_vm2, %v3919_v23, 0.0 }
 0x5da   : > { %850 = vadd.xlane.f32.xlu0 %v849_v24  ;;  %v3269_v24 = vcombine.low %v1151_v20, %v1159_v21  ;;  %v1173_v21 = vld [vmem:[%s4912_s6 + $0xb0] sm:$0xff] }
 0x5f0   : > { %855 = vrot.lane.b32.xlu0 %v4148_v7, %s4005_s19  ;;  %s3186_s19 = sshll.u32 %s404_s18, 4  ;;  %s4865_s19 = int_to_ptr.vmem [resolvable:$true] %s3186_s19 }
 0x5f1   : > { %s3930_s29 = scalar_lea.vmem %s4865_s19, 128  ;;  %p3937_p0 = scmp.lt.s32.totalorder %s4865_s19, %s3935_s26 }
 0x5f2   : > { %p3931_p11 = scmp.ne.s32.totalorder %s4865_s19, %s3930_s29  ;;  %p3938_p1 = scmp.lt.s32.totalorder %s3936_s15, %s3930_s29 }
 0x5f4   : > { %p3932_p12 = pnand %p3931_p11, %p4112_p5  ;;  %p3939_p2 = por %p3938_p1, %p3937_p0 }
 0x5f6   : > { %p3933_p13 = pneg %p3932_p12 }
 0x5f8   : > { %p3940_p3 = pnand %p3939_p2, %p3933_p13 }
 0x667   : > { %v851_v25 = vpop.xlane.xlu0 %850 }
 0x668   : > { %3920 = vrcp.f32 %v851_v25 }
 0x66b   : > { %v856_v26 = vpop.permute.xlu0 %855 }
 0x66c   : > { %v861_v27 = vsel %vm542_vm3, %v856_v26, 0 }
 0x66d   : > { %3698 = vmatpush3.bf16.msra.mxu0 %v861_v27  ;;  %v1167_v27 = vld [vmem:[%s4912_s6 + $0x80] sm:$0xff] }
 0x66e   : > { %3709 = vmatprep.subr.bf16.mxu0 %v3994_v1 }
 0x672   : > { %v3921_v10 = vpop.eup %3920 }
 0x673   : > { %v853_v28 = vmul.f32 %v3921_v10, %v3919_v23  ;;  %v1160_v23 = vld [vmem:[%s4912_s6 + $0x48] sm:$0xff]  ;;  %v1175_v10 = vld [vmem:[%s4912_s6 + $0xc0] sm:$0xff] }
 0x674   : > { %v3286_v29 = vcombine.high %v1167_v27, %v1175_v10 }
 0x675   : > { %v854_v30 = vpack.c.bf16 %v853_v28, %v853_v28  ;;  %v1168_v28 = vld [vmem:[%s4912_s6 + $0x88] sm:$0xff] }
 0x677   : > { %3700 = vmatmul.mubr.msk.bf16.vlgmr.msra.gmra.mrb[16].mxu0 %vm478_vm2, %v854_v30  ;;  %v1176_v30 = vld [vmem:[%s4912_s6 + $0xc8] sm:$0xff] }
 0x678   : > { %3710 = vmatpush3.bf16.xpose.msra.mxu0 %v960_v31  ;;  %3711 = vmatprep.mubr.msk.bf16.mxu0 %vm3995_vm0, %v3994_v1  ;;  %v3285_v31 = vcombine.low %v1167_v27, %v1175_v10  ;;  %v3288_v33 = vcombine.high %v1168_v28, %v1176_v30 }
 0x679   : > { %3721 = vmatprep.subr.bf16.mxu0 %v3994_v1 }
 0x67f   : > { %3712 = vmatmul.mubr.msk.bf16.vlgmr.msra.gmra.mrb[20].mxu0 %vm478_vm2, %v953_v32  ;;  %v3287_v32 = vcombine.low %v1168_v28, %v1176_v30  ;;  %v3783_v30 = vld [vmem:[%s4914_s8 + $0xc0] sm:$0xff]  }
 0x680   : > { %3723 = vmatprep.mubr.msk.bf16.mxu0 %vm3995_vm0, %v3994_v1  ;;  %3722 = vmatpush3.bf16.msra.mxu0 %v1068_v52  ;;  %v1170_v52 = vld [vmem:[%s4912_s6 + $0x98] sm:$0xff] }
 0x74a   : > { %v897_v35 = vpop.f32.mrb[16].mxu0 }
 0x74b   : > { %v903_v36 = vpack.c.bf16 %v897_v35, %v897_v35  ;;  %v3701_v37 = vpop.f32.mrb[17].mxu0  ;;  %v1161_v35 = vld [vmem:[%s4912_s6 + $0x50] sm:$0xff] }
 0x74c   : > { %v900_v38 = vpop.f32.mrb[18].mxu0  ;;  %v4007_v37 = vmov 0  }
 0x74d   : > { %v3702_v39 = vpop.f32.mrb[19].mxu0  ;;  %3706 = vmatmul.mubr.msk.bf16.vlgmr.msra.gmra.mrb[16].mxu1 %vm478_vm2, %v903_v36  ;;  %v1154_v36 = vld [vmem:[%s4912_s6 + $0x18] sm:$0xff]  ;;  %v3274_v38 = vcombine.high %v1153_v34, %v1161_v35 }
 0x74e   : > { %3717 = vmatprep.mubr.msk.bf16.mxu1 %vm3995_vm0, %v3994_v1  ;;  %v1162_v39 = vld [vmem:[%s4912_s6 + $0x58] sm:$0xff] }
 0x752   : > { %v996_v40 = vpop.f32.mrb[20].mxu0 }
 0x753   : > { %v3713_v41 = vpop.f32.mrb[21].mxu0  ;;  %v1002_v42 = vsel %vm478_vm2, %v996_v40, -inf }
 0x754   : > { %1003 = vmax.xlane.f32.xlu0 %v1002_v42  ;;  %v999_v43 = vpop.f32.mrb[22].mxu0  ;;  %v3275_v41 = vcombine.low %v1154_v36, %v1162_v39  ;;  %v3276_v42 = vcombine.high %v1154_v36, %v1162_v39  ;;  %v3789_v36 = vld [vmem:[%s4914_s8 + $0x88] sm:$0xff]   ;;  %v3792_v39 = vld [vmem:[%s4914_s8 + $0x10] sm:$0xff]  }
 0x755   : > { %v3714_v44 = vpop.f32.mrb[23].mxu0 }
 0x76a   : > { %1014 = vrot.lane.b32.xlu0 %v4148_v7, %s4006_s28  ;;  %s3173_s28 = scalar_lea.sflag [#allocation3], %s402_s0 }
 0x7e1   : > { %v1004_v45 = vpop.xlane.xlu0 %1003 }
 0x7e2   : > { %v1005_v46 = vsub.f32 %v996_v40, %v1004_v45  ;;  %v3273_v40 = vcombine.low %v1153_v34, %v1161_v35  ;;  %v3787_v34 = vld [vmem:[%s4914_s8 + $0xc8] sm:$0xff]  }
 0x7e3   : > { %v3788_v35 = vld [vmem:[%s4914_s8 + $0x8] sm:$0xff]  }
 0x7e4   : > { %v1006_v47 = vmul.f32 1.442695, %v1005_v46 }
 0x7e5   : > { %v1015_v48 = vpop.permute.xlu0 %1014 }
 0x7e6   : > { %3922 = vpow2.f32 %v1006_v47  ;;  %v1020_v49 = vsel %vm542_vm3, %v1015_v48, 0  ;;  %v3267_v47 = vld [vmem:[%s4910_s4] ss:$0 sm:$0xff] }
 0x7e7   : > { %3716 = vmatpush3.bf16.msra.mxu1 %v1020_v49  ;;  %v3268_v49 = vld [vmem:[%s4911_s5] ss:$0 sm:$0xff] }
 0x7e8   : > { %1430 = vmatprep.subr.bf16.mxu1 %v3270_v22  ;;  %v1174_v22 = vld [vmem:[%s4912_s6 + $0xb8] sm:$0xff] }
 0x7f0   : > { %v3923_v50 = vpop.eup %3922 }
 0x7f1   : > { %v1008_v1 = vsel %vm478_vm2, %v3923_v50, 0.0 }
 0x7f2   : > { %1009 = vadd.xlane.f32.xlu1 %v1008_v1  ;;  %v1169_v1 = vld [vmem:[%s4912_s6 + $0x90] sm:$0xff] }
 0x820   : > { %v945_v7 = vpop.f32.mrb[16].mxu1 }
 0x821   : > { %v951_v53 = vadd.f32 %v945_v7, %v4205_v11  ;;  %v3707_v54 = vpop.f32.mrb[17].mxu1  ;;  %v1178_v7 = vld [vmem:[%s4912_s6 + $0xd8] sm:$0xff] }
 0x822   : > { %v948_v55 = vpop.f32.mrb[18].mxu1 }
 0x823   : > { %v3708_v56 = vpop.f32.mrb[19].mxu1  ;;  %v3290_v55 = vcombine.high %v1169_v1, %v1177_v51 }
 0x824   : > { %v3292_v56 = vcombine.high %v1170_v52, %v1178_v7 }
 0x87f   : > { %v1010_v57 = vpop.xlane.xlu1 %1009 }
 0x880   : > { %3924 = vrcp.f32 %v1010_v57  ;;  %v1155_v57 = vld [vmem:[%s4912_s6 + $0x20] sm:$0xff] }
 0x88a   : > { %v3925_v58 = vpop.eup %3924 }
 0x88b   : > { %v1012_v59 = vmul.f32 %v3925_v58, %v3923_v50  ;;  %v1163_v58 = vld [vmem:[%s4912_s6 + $0x60] sm:$0xff] }
 0x88d   : > { %v1013_v60 = vpack.c.bf16 %v1012_v59, %v1012_v59  ;;  %v1156_v59 = vld [vmem:[%s4912_s6 + $0x28] sm:$0xff] }
 0x88f   : > { %3718 = vmatmul.mubr.msk.bf16.vlgmr.msra.gmra.mrb[20].mxu1 %vm478_vm2, %v1013_v60  ;;  %v1164_v60 = vld [vmem:[%s4912_s6 + $0x68] sm:$0xff] }
 0x890   : > { %1431 = vmatpush1.bf16.msra.mxu1 %v3269_v24  ;;  %1462 = vmatprep.mubr.bf16.mxu1 %v4007_v37 }
 0x891   : > { %1432 = vmatprep.subr.bf16.mxu1 %v3286_v29  ;;  %v3782_v29 = vld [vmem:[%s4914_s8 + $0x40] sm:$0xff]  }
 0x894   : > { %1433 = vmatpush1.bf16.msra.mxu1 %v3285_v31  ;;  %v3784_v31 = vld [vmem:[%s4914_s8] sm:$0xff]  }
 0x895   : > { %1512 = vmatprep.subr.bf16.mxu1 %v3274_v38  ;;  %v3791_v38 = vld [vmem:[%s4914_s8 + $0xd0] sm:$0xff]  }
 0x962   : > { %v1056_v61 = vpop.f32.mrb[20].mxu1 }
 0x963   : > { %v1062_v62 = vpack.c.bf16 %v1056_v61, %v1056_v61  ;;  %v3719_v63 = vpop.f32.mrb[21].mxu1  ;;  %v3289_v61 = vcombine.low %v1169_v1, %v1177_v51  ;;  %v3804_v1 = vld [vmem:[%s4914_s8 + $0x28] sm:$0xff]  }
 0x964   : > { %v1059_v0 = vpop.f32.mrb[22].mxu1  ;;  %v3278_v63 = vcombine.high %v1155_v57, %v1163_v58  ;;  %v3805_v51 = vld [vmem:[%s4914_s8 + $0xa8] sm:$0xff]  }
 0x965   : > { %v3720_v2 = vpop.f32.mrb[23].mxu1  ;;  %3724 = vmatmul.mubr.msk.bf16.vlgmr.msra.gmra.mrb[24].mxu0 %vm478_vm2, %v1062_v62  ;;  %v3291_v62 = vcombine.low %v1170_v52, %v1178_v7  ;;  %v3280_v0 = vcombine.high %v1156_v59, %v1164_v60  ;;  %v3806_v52 = vld [vmem:[%s4914_s8 + $0x70] sm:$0xff]  }
 0x966   : > { %1503 = vmatprep.mubr.bf16.mxu0 %v4007_v37  ;;  %v1171_v2 = vld [vmem:[%s4912_s6 + $0xa0] sm:$0xff]  ;;  %v3807_v7 = vld [vmem:[%s4914_s8 + $0xf0] sm:$0xff]  }
 0xa38   : > { %v1104_v4 = vpop.f32.mrb[24].mxu0 }
 0xa39   : > { %v1110_v6 = vadd.f32 %v1104_v4, %v951_v53  ;;  %v3725_v8 = vpop.f32.mrb[25].mxu0  ;;  %v1179_v4 = vld [vmem:[%s4912_s6 + $0xe0] sm:$0xff] }
 0xa3a   : > { %v1107_v9 = vpop.f32.mrb[26].mxu0  ;;  %v3277_v8 = vcombine.low %v1155_v57, %v1163_v58  ;;  %v3811_v57 = vld [vmem:[%s4914_s8 + $0xf8] sm:$0xff]  }
 0xa3b   : > { %v1118_v11 = vadd.f32 %v3266_v5, %v1110_v6  ;;  %v3726_v12 = vpop.f32.mrb[27].mxu0  ;;  %v1172_v5 = vld [vmem:[%s4912_s6 + $0xa8] sm:$0xff]  ;;  %v3279_v9 = vcombine.low %v1156_v59, %v1164_v60  ;;  %v3812_v58 = vld [vmem:[%s4914_s8 + $0x38] sm:$0xff]   ;;  %v3814_v60 = vld [vmem:[%s4914_s8 + $0x140] sm:$0xff]  }
 0xa3c   : > { %v1180_v6 = vld [vmem:[%s4912_s6 + $0xe8] sm:$0xff]  ;;  %v3813_v59 = vld [vmem:[%s4914_s8 + $0xb8] sm:$0xff]  }
 0xa3d   : > { %v1119_v13 = vadd.f32 %v1118_v11, %v4141_v3  ;;  %v1152_v3 = vld [vmem:[%s4912_s6 + $0x8] sm:$0xff]  ;;  %v3294_v11 = vcombine.high %v1171_v2, %v1179_v4  ;;  %v3296_v12 = vcombine.high %v1172_v5, %v1180_v6 }
 0xa3e   : > { %v3271_v25 = vcombine.low %v1152_v3, %v1160_v23  ;;  %v3272_v26 = vcombine.high %v1152_v3, %v1160_v23  ;;  %v1181_v3 = vld [vmem:[%s4912_s6 + $0xf0] sm:$0xff]  ;;  %v1182_v23 = vld [vmem:[%s4912_s6 + $0xf8] sm:$0xff] }
 0xa3f   : > { %v1120_v14 = vsel %vm428_vm1, %v1119_v13, 0.0  ;;  %v3300_v27 = vcombine.high %v1174_v22, %v1182_v23  ;;  %v3297_v10 = vcombine.low %v1173_v21, %v1181_v3  ;;  %v3299_v28 = vcombine.low %v1174_v22, %v1182_v23 }
 0xa40   : > { %1121 = vadd.xlane.f32.xlu1 %v1120_v14  ;;  %1471 = vmatprep.subr.bf16.mxu0 %v3272_v26  ;;  %v1165_v14 = vld [vmem:[%s4912_s6 + $0x70] sm:$0xff]  ;;  %v3298_v26 = vcombine.high %v1173_v21, %v1181_v3 }
 0xa41   : > { %1472 = vmatpush1.bf16.msra.mxu0 %v3271_v25 }
 0xa42   : > { %1473 = vmatprep.subr.bf16.mxu0 %v3288_v33  ;;  %v3786_v33 = vld [vmem:[%s4914_s8 + $0x48] sm:$0xff]  }
 0xa45   : > { %1474 = vmatpush1.bf16.msra.mxu0 %v3287_v32  ;;  %v3785_v32 = vld [vmem:[%s4914_s8 + $0x80] sm:$0xff]  }
 0xa46   : > { %1553 = vmatprep.subr.bf16.mxu0 %v3276_v42  ;;  %v3795_v42 = vld [vmem:[%s4914_s8 + $0xd8] sm:$0xff]  }
 0xacd   : > { %v1122_v15 = vpop.xlane.xlu1 %1121 }
 0xace   : > { %v1124_v16 = vmul.f32 0.03125, %v1122_v15  ;;  %v1158_v15 = vld [vmem:[%s4912_s6 + $0x38] sm:$0xff] }
 0xad0   : > { %v1125_v17 = vsub.f32 %v1119_v13, %v1124_v16  ;;  %v1157_v13 = vld [vmem:[%s4912_s6 + $0x30] sm:$0xff]  ;;  %v1166_v16 = vld [vmem:[%s4912_s6 + $0x78] sm:$0xff] }
 0xad1   : > { %v3284_v20 = vcombine.high %v1158_v15, %v1166_v16  ;;  %v3281_v24 = vcombine.low %v1157_v13, %v1165_v14  ;;  %v3283_v25 = vcombine.low %v1158_v15, %v1166_v16 }
 0xad2   : > { %v1126_v18 = vmul.f32 %v1125_v17, %v1125_v17 }
 0xad4   : > { %v1127_v19 = vsel %vm428_vm1, %v1126_v18, 0.0  ;;  %v3295_v18 = vcombine.low %v1172_v5, %v1180_v6 }
 0xad5   : > { %1128 = vadd.xlane.f32.xlu1 %v1127_v19  ;;  %v3282_v19 = vcombine.high %v1157_v13, %v1165_v14 }
 0xb62   : > { %v1129_v43 = vpop.xlane.xlu1 %1128 }
 0xb63   : > { %v1130_v44 = vmul.f32 0.03125, %v1129_v43  ;;  %v3796_v43 = vld [vmem:[%s4914_s8 + $0x18] sm:$0xff]  }
 0xb65   : > { %v1131_v45 = vadd.f32 1e-05, %v1130_v44  ;;  %v3797_v44 = vld [vmem:[%s4914_s8 + $0x98] sm:$0xff]  }
 0xb67   : > { %3926 = vrsqrt.f32 %v1131_v45  ;;  %v3798_v45 = vld [vmem:[%s4914_s8 + $0x60] sm:$0xff]  }
 0xb71   : > { %v3927_v46 = vpop.eup %3926 }
 0xb72   : > { %v1133_v48 = vmul.f32 %v3927_v46, %v1125_v17  ;;  %v3293_v17 = vcombine.low %v1171_v2, %v1179_v4  ;;  %v3799_v46 = vld [vmem:[%s4914_s8 + $0xe0] sm:$0xff]   ;;  %v4487_v2 = vld [vmem:[%s4913_s7 + $0x8] sm:$0xff] }
 0xb74   : > { %v1141_v50 = vmul.f32 %v3267_v47, %v1133_v48  ;;  %v3800_v47 = vld [vmem:[%s4914_s8 + $0x20] sm:$0xff]  }
 0xb75   : > { %v3801_v48 = vld [vmem:[%s4914_s8 + $0xa0] sm:$0xff]  }
 0xb76   : > { %v4303_v53 = vadd.f32 %v3268_v49, %v1141_v50  ;;  %v3802_v49 = vld [vmem:[%s4914_s8 + $0x68] sm:$0xff]  }
 0xb77   : > { %v3803_v50 = vld [vmem:[%s4914_s8 + $0xe8] sm:$0xff]  }
 0xb78   : > { %v4307_v54 = vpack.c.bf16 %v4303_v53, %v4303_v53 }
 0xb7a   : > { %3301 = vmatmul.mubr.msk.bf16.vlgmr.msra.gmra.mrb[24].mxu1 %vm428_vm1, %v4307_v54  ;;  %3302 = vmatmul.mubr.msk.bf16.vlgmr.msra.gmra.mrb[28].mxu0 %vm428_vm1, %v4307_v54 }
 0xb7b   : > { %1513 = vmatpush1.bf16.msra.mxu1 %v3273_v40  ;;  %1554 = vmatpush1.bf16.msra.mxu0 %v3275_v41  ;;  %v3793_v40 = vld [vmem:[%s4914_s8 + $0x90] sm:$0xff]   ;;  %v3794_v41 = vld [vmem:[%s4914_s8 + $0x58] sm:$0xff]  }
 0xb7c   : > { %1514 = vmatprep.subr.bf16.mxu1 %v3290_v55  ;;  %1555 = vmatprep.subr.bf16.mxu0 %v3292_v56  ;;  %v3809_v55 = vld [vmem:[%s4914_s8 + $0xb0] sm:$0xff]   ;;  %v3810_v56 = vld [vmem:[%s4914_s8 + $0x78] sm:$0xff]  }
 0xb7d   : > { %1544 = vmatprep.mubr.bf16.mxu1 %v4007_v37  ;;  %1585 = vmatprep.mubr.bf16.mxu0 %v4007_v37 }
 0xb7f   : > { %1515 = vmatpush1.bf16.msra.mxu1 %v3289_v61  ;;  %1556 = vmatpush1.bf16.msra.mxu0 %v3291_v62  ;;  %v3815_v61 = vld [vmem:[%s4914_s8 + $0x1c0] sm:$0xff]   ;;  %v1187_v62 = vlaneseq }
 0xb80   : > { %1594 = vmatprep.subr.bf16.mxu1 %v3278_v63  ;;  %1635 = vmatprep.subr.bf16.mxu0 %v3280_v0 }
 0xb81   : > { %v4481_v63 = vshrl.u32 %v1187_v62, 7  ;;  %v3825_v62 = vld [vmem:[%s4914_s8 + $0x190] sm:$0xff]  }
 0xb82   : > { %3303 = vmatmul.mubr.msk.bf16.vlgmr.msra.gmra.mrb[28].mxu1 %vm428_vm1, %v4307_v54  ;;  %3304 = vmatmul.mubr.msk.bf16.vlgmr.msra.gmra.mrb[32].mxu0 %vm428_vm1, %v4307_v54 }
 0xb83   : > { %1595 = vmatpush1.bf16.msra.mxu1 %v3277_v8  ;;  %1636 = vmatpush1.bf16.msra.mxu0 %v3279_v9  ;;  %v1213_v0 = vsub.s32 6, %v4481_v63  ;;  %v1189_v5 = vsub.s32 0, %v4481_v63  ;;  %v1197_v6 = vsub.s32 2, %v4481_v63  ;;  %v4499_v8 = vld [vmem:[%s4913_s7] sm:$0xff]  ;;  %v1193_v9 = vsub.s32 1, %v4481_v63 }
 0xb84   : > { %1596 = vmatprep.subr.bf16.mxu1 %v3294_v11  ;;  %1637 = vmatprep.subr.bf16.mxu0 %v3296_v12  ;;  %v1201_v11 = vsub.s32 3, %v4481_v63 }
 0xb85   : > { %1626 = vmatprep.mubr.bf16.mxu1 %v4007_v37  ;;  %1667 = vmatprep.mubr.bf16.mxu0 %v4007_v37  ;;  %v4492_v4 = vrot.slane %v4487_v2, %v1213_v0  ;;  %v1190_v12 = vrot.slane %v4499_v8, %v1189_v5  ;;  %v1198_v13 = vrot.slane %v4499_v8, %v1197_v6 }
 0xb86   : > { %v1194_v14 = vrot.slane %v4499_v8, %v1193_v9  ;;  %v1202_v15 = vrot.slane %v4499_v8, %v1201_v11 }
 0xb87   : > { %1597 = vmatpush1.bf16.msra.mxu1 %v3293_v17  ;;  %1638 = vmatpush1.bf16.msra.mxu0 %v3295_v18 }
 0xb88   : > { %1676 = vmatprep.subr.bf16.mxu1 %v3282_v19  ;;  %1717 = vmatprep.subr.bf16.mxu0 %v3284_v20 }
 0xb8a   : > { %3305 = vmatmul.mubr.msk.bf16.vlgmr.msra.gmra.mrb[32].mxu1 %vm428_vm1, %v4307_v54  ;;  %3306 = vmatmul.mubr.msk.bf16.vlgmr.msra.gmra.mrb[36].mxu0 %vm428_vm1, %v4307_v54 }
 0xb8b   : > { %1677 = vmatpush1.bf16.msra.mxu1 %v3281_v24  ;;  %1718 = vmatpush1.bf16.msra.mxu0 %v3283_v25  ;;  %v1209_v25 = vsub.s32 5, %v4481_v63 }
 0xb8c   : > { %1678 = vmatprep.subr.bf16.mxu1 %v3298_v26  ;;  %1719 = vmatprep.subr.bf16.mxu0 %v3300_v27  ;;  %v1217_v26 = vsub.s32 7, %v4481_v63 }
 0xb8d   : > { %1708 = vmatprep.mubr.bf16.mxu1 %v4007_v37  ;;  %1749 = vmatprep.mubr.bf16.mxu0 %v4007_v37  ;;  %v3790_v37 = vld [vmem:[%s4914_s8 + $0x50] sm:$0xff]  }
 0xb8f   : > { %1679 = vmatpush1.bf16.msra.mxu1 %v3297_v10  ;;  %1720 = vmatpush1.bf16.msra.mxu0 %v3299_v28 }
 0xb90   : > { %3471 = vmatprep.subr.bf16.mxu1 %v3782_v29  ;;  %3493 = vmatprep.subr.bf16.mxu0 %v3783_v30 }
 0xb92   : > { %3307 = vmatmul.mubr.msk.bf16.vlgmr.msra.gmra.mrb[36].mxu1 %vm428_vm1, %v4307_v54  ;;  %3308 = vmatmul.mubr.msk.bf16.vlgmr.msra.gmra.mrb[40].mxu0 %vm428_vm1, %v4307_v54  ;;  %v3808_v54 = vld [vmem:[%s4914_s8 + $0x30] sm:$0xff]  }
 0xb93   : > { %3472 = vmatpush3.bf16.msra.mxu1 %v3784_v31  ;;  %3494 = vmatpush3.bf16.msra.mxu0 %v3785_v32 }
 0xb94   : > { %3473 = vmatprep.subr.bf16.mxu1 %v3786_v33  ;;  %3495 = vmatprep.subr.bf16.mxu0 %v3787_v34  ;;  %v1210_v34 = vrot.slane %v4499_v8, %v1209_v25 }
 0xb97   : > { %3474 = vmatpush3.bf16.msra.mxu1 %v3788_v35  ;;  %3496 = vmatpush3.bf16.msra.mxu0 %v3789_v36  ;;  %v1218_v35 = vrot.slane %v4499_v8, %v1217_v26  ;;  %v3816_v36 = vld [vmem:[%s4914_s8 + $0x100] sm:$0xff]  }
 0xb98   : > { %3475 = vmatprep.subr.bf16.mxu1 %v3790_v37  ;;  %3497 = vmatprep.subr.bf16.mxu0 %v3791_v38  ;;  %v3817_v37 = vld [vmem:[%s4914_s8 + $0x180] sm:$0xff]  }
 0xb9b   : > { %3476 = vmatpush3.bf16.msra.mxu1 %v3792_v39  ;;  %3498 = vmatpush3.bf16.msra.mxu0 %v3793_v40  ;;  %v3818_v40 = vld [vmem:[%s4914_s8 + $0x148] sm:$0xff]  }
 0xb9c   : > { %3477 = vmatprep.subr.bf16.mxu1 %v3794_v41  ;;  %3499 = vmatprep.subr.bf16.mxu0 %v3795_v42  ;;  %v3819_v41 = vld [vmem:[%s4914_s8 + $0x1c8] sm:$0xff]  }
 0xb9f   : > { %3478 = vmatpush3.bf16.msra.mxu1 %v3796_v43  ;;  %3500 = vmatpush3.bf16.msra.mxu0 %v3797_v44 }
 0xba0   : > { %3479 = vmatprep.subr.bf16.mxu1 %v3798_v45  ;;  %3501 = vmatprep.subr.bf16.mxu0 %v3799_v46 }
 0xba3   : > { %3480 = vmatpush3.bf16.msra.mxu1 %v3800_v47  ;;  %3502 = vmatpush3.bf16.msra.mxu0 %v3801_v48 }
 0xba4   : > { %3481 = vmatprep.subr.bf16.mxu1 %v3802_v49  ;;  %3503 = vmatprep.subr.bf16.mxu0 %v3803_v50  ;;  %v3820_v50 = vld [vmem:[%s4914_s8 + $0x108] sm:$0xff]  }
 0xba7   : > { %3482 = vmatpush3.bf16.msra.mxu1 %v3804_v1  ;;  %3504 = vmatpush3.bf16.msra.mxu0 %v3805_v51  ;;  %v3821_v1 = vld [vmem:[%s4914_s8 + $0x188] sm:$0xff]  }
 0xba8   : > { %3483 = vmatprep.subr.bf16.mxu1 %v3806_v52  ;;  %3505 = vmatprep.subr.bf16.mxu0 %v3807_v7  ;;  %v3822_v7 = vld [vmem:[%s4914_s8 + $0x150] sm:$0xff]  }
 0xbab   : > { %3484 = vmatpush3.bf16.msra.mxu1 %v3808_v54  ;;  %3506 = vmatpush3.bf16.msra.mxu0 %v3809_v55  ;;  %v3823_v54 = vld [vmem:[%s4914_s8 + $0x1d0] sm:$0xff]  }
 0xbac   : > { %3485 = vmatprep.subr.bf16.mxu1 %v3810_v56  ;;  %3507 = vmatprep.subr.bf16.mxu0 %v3811_v57  ;;  %v1222_v57 = vrot.slane %v4487_v2, %v1189_v5  ;;  %v3826_v5 = vld [vmem:[%s4914_s8 + $0x158] sm:$0xff]  }
 0xbaf   : > { %3486 = vmatpush3.bf16.msra.mxu1 %v3812_v58  ;;  %3508 = vmatpush3.bf16.msra.mxu0 %v3813_v59  ;;  %v1230_v58 = vrot.slane %v4487_v2, %v1197_v6  ;;  %v3827_v6 = vld [vmem:[%s4914_s8 + $0x1d8] sm:$0xff]  }
 0xbb0   : > { %3515 = vmatprep.subr.bf16.mxu1 %v3814_v60  ;;  %3537 = vmatprep.subr.bf16.mxu0 %v3815_v61  ;;  %v3824_v61 = vld [vmem:[%s4914_s8 + $0x110] sm:$0xff]  }
 0xc4d   : > { %v1464_v16 = vpop.f32.mrb[24].mxu1  ;;  %v1505_v17 = vpop.f32.mrb[28].mxu0 }
 0xc4e   : > { %v1465_v18 = vadd.f32 %v1464_v16, %v1190_v12  ;;  %v1506_v19 = vadd.f32 %v1505_v17, %v1198_v13  ;;  %v1466_v20 = vpop.f32.mrb[25].mxu1  ;;  %v1507_v21 = vpop.f32.mrb[29].mxu0 }
 0xc4f   : > { %v1467_v3 = vadd.f32 %v1466_v20, %v1194_v14  ;;  %v1508_v22 = vadd.f32 %v1507_v21, %v1202_v15  ;;  %v1468_v23 = vpop.f32.mrb[26].mxu1  ;;  %v1509_v24 = vpop.f32.mrb[30].mxu0  ;;  %v3828_v20 = vld [vmem:[%s4914_s8 + $0x118] sm:$0xff]  }
 0xc50   : > { %v1758_v27 = vmax.f32 %v1465_v18, 0.0  ;;  %v1760_v10 = vmax.f32 %v1506_v19, 0.0  ;;  %v1469_v28 = vpop.f32.mrb[27].mxu1  ;;  %v1510_v29 = vpop.f32.mrb[31].mxu0  ;;  %v3829_v21 = vld [vmem:[%s4914_s8 + $0x198] sm:$0xff]   ;;  %v3830_v24 = vld [vmem:[%s4914_s8 + $0x160] sm:$0xff]  }
 0xc51   : > { %v1759_v30 = vmax.f32 %v1467_v3, 0.0  ;;  %v1761_v31 = vmax.f32 %v1508_v22, 0.0  ;;  %v1205_v3 = vsub.s32 4, %v4481_v63  ;;  %v3832_v28 = vld [vmem:[%s4914_s8 + $0x120] sm:$0xff]   ;;  %v3875_v63 = vld [vmem:[%s4914_s8 + $0x2f8] sm:$0xff]  }
 0xc52   : > { %v1774_v38 = vpack.c.bf16 %v1758_v27, %v1758_v27  ;;  %v1776_v39 = vpack.c.bf16 %v1760_v10, %v1760_v10  ;;  %v3831_v27 = vld [vmem:[%s4914_s8 + $0x1e0] sm:$0xff]  }
 0xc53   : > { %v1775_v32 = vpack.c.bf16 %v1759_v30, %v1759_v30  ;;  %v1777_v33 = vpack.c.bf16 %v1761_v31, %v1761_v31  ;;  %v1238_v10 = vrot.slane %v4487_v2, %v1205_v3  ;;  %v3833_v29 = vld [vmem:[%s4914_s8 + $0x1a0] sm:$0xff]   ;;  %v3834_v30 = vld [vmem:[%s4914_s8 + $0x168] sm:$0xff]  }
 0xc54   : > { %v3835_v31 = vld [vmem:[%s4914_s8 + $0x1e8] sm:$0xff]  }
 0xc55   : > { %v4531_v42 = vpop.f32.mrb[28].mxu1  ;;  %v4533_v43 = vpop.f32.mrb[32].mxu0  ;;  %2853 = vmatprep.mubr.bf16.mxu1 %v1775_v32  ;;  %2893 = vmatprep.mubr.bf16.mxu0 %v1777_v33 }
 0xc56   : > { %v1548_v44 = vpop.f32.mrb[29].mxu1  ;;  %v1589_v45 = vpop.f32.mrb[33].mxu0  ;;  %2854 = vmatmul.mubr.bf16.vlgmr.msra.gmra.mrb[40].mxu1 %v1774_v38  ;;  %2894 = vmatmul.mubr.bf16.vlgmr.msra.gmra.mrb[44].mxu0 %v1776_v39 }
 0xc57   : > { %v1549_v46 = vadd.f32 %v1548_v44, %v1210_v34  ;;  %v1590_v47 = vadd.f32 %v1589_v45, %v1218_v35  ;;  %3516 = vmatpush3.bf16.msra.mxu1 %v3816_v36  ;;  %3538 = vmatpush3.bf16.msra.mxu0 %v3817_v37  ;;  %v1550_v48 = vpop.f32.mrb[30].mxu1  ;;  %v1591_v49 = vpop.f32.mrb[34].mxu0  ;;  %v1206_v44 = vrot.slane %v4499_v8, %v1205_v3  ;;  %v3857_v3 = vld [vmem:[%s4914_s8 + $0x290] sm:$0xff]  }
 0xc58   : > { %v1551_v51 = vpop.f32.mrb[31].mxu1  ;;  %v1592_v52 = vpop.f32.mrb[35].mxu0  ;;  %3517 = vmatprep.subr.bf16.mxu1 %v3818_v40  ;;  %3539 = vmatprep.subr.bf16.mxu0 %v3819_v41  ;;  %v3836_v40 = vld [vmem:[%s4914_s8 + $0x128] sm:$0xff]   ;;  %v3839_v48 = vld [vmem:[%s4914_s8 + $0x1f0] sm:$0xff]   ;;  %v1226_v49 = vrot.slane %v4487_v2, %v1193_v9  ;;  %v3842_v9 = vld [vmem:[%s4914_s8 + $0x178] sm:$0xff]  }
 0xc59   : > { %v1763_v55 = vmax.f32 %v1549_v46, 0.0  ;;  %v1765_v56 = vmax.f32 %v1590_v47, 0.0  ;;  %v3837_v41 = vld [vmem:[%s4914_s8 + $0x1a8] sm:$0xff]   ;;  %v3838_v47 = vld [vmem:[%s4914_s8 + $0x170] sm:$0xff]  }
 0xc5b   : > { %v1779_v59 = vpack.c.bf16 %v1763_v55, %v1763_v55  ;;  %v1781_v60 = vpack.c.bf16 %v1765_v56, %v1765_v56  ;;  %3518 = vmatpush3.bf16.msra.mxu1 %v3820_v50  ;;  %3540 = vmatpush3.bf16.msra.mxu0 %v3821_v1  ;;  %v3841_v50 = vld [vmem:[%s4914_s8 + $0x1b0] sm:$0xff]   ;;  %v1547_v1 = vadd.f32 %v4531_v42, %v1206_v44  ;;  %v3844_v42 = vld [vmem:[%s4914_s8 + $0x138] sm:$0xff]   ;;  %v3846_v56 = vld [vmem:[%s4914_s8 + $0x240] sm:$0xff]  }
 0xc5c   : > { %3519 = vmatprep.subr.bf16.mxu1 %v3822_v7  ;;  %3541 = vmatprep.subr.bf16.mxu0 %v3823_v54  ;;  %v1250_v44 = vrot.slane %v4487_v2, %v1217_v26  ;;  %v3876_v26 = vld [vmem:[%s4914_s8 + $0x238] sm:$0xff]  }
 0xc5d   : > { %v1628_v12 = vpop.f32.mrb[32].mxu1  ;;  %v1669_v13 = vpop.f32.mrb[36].mxu0  ;;  %2933 = vmatprep.mubr.bf16.mxu1 %v1779_v59  ;;  %2973 = vmatprep.mubr.bf16.mxu0 %v1781_v60  ;;  %v1762_v54 = vmax.f32 %v1547_v1, 0.0  ;;  %v3848_v60 = vld [vmem:[%s4914_s8 + $0x200] sm:$0xff]  }
 0xc5e   : > { %v4561_v14 = vadd.f32 %v1628_v12, %v1222_v57  ;;  %v4563_v15 = vadd.f32 %v1669_v13, %v1230_v58  ;;  %v1630_v16 = vpop.f32.mrb[33].mxu1  ;;  %v1671_v17 = vpop.f32.mrb[37].mxu0  ;;  %v3847_v57 = vld [vmem:[%s4914_s8 + $0x2c0] sm:$0xff]   ;;  %v3850_v12 = vld [vmem:[%s4914_s8 + $0x248] sm:$0xff]  }
 0xc5f   : > { %3520 = vmatpush3.bf16.msra.mxu1 %v3824_v61  ;;  %3542 = vmatpush3.bf16.msra.mxu0 %v3825_v62  ;;  %v1632_v18 = vpop.f32.mrb[34].mxu1  ;;  %v1673_v19 = vpop.f32.mrb[38].mxu0  ;;  %v1631_v52 = vadd.f32 %v1630_v16, %v1226_v49  ;;  %v1778_v61 = vpack.c.bf16 %v1762_v54, %v1762_v54  ;;  %v3851_v13 = vld [vmem:[%s4914_s8 + $0x2c8] sm:$0xff]   ;;  %v3878_v49 = vld [vmem:[%s4914_s8 + $0x340] sm:$0xff]   ;;  %v3887_v54 = vld [vmem:[%s4914_s8 + $0x3d0] sm:$0xff]  }
 0xc60   : > { %v1633_v22 = vpop.f32.mrb[35].mxu1  ;;  %v1674_v23 = vpop.f32.mrb[39].mxu0  ;;  %3521 = vmatprep.subr.bf16.mxu1 %v3826_v5  ;;  %3543 = vmatprep.subr.bf16.mxu0 %v3827_v6  ;;  %v3849_v5 = vld [vmem:[%s4914_s8 + $0x280] sm:$0xff]   ;;  %v3853_v18 = vld [vmem:[%s4914_s8 + $0x288] sm:$0xff]   ;;  %v3854_v19 = vld [vmem:[%s4914_s8 + $0x250] sm:$0xff]  }
 0xc61   : > { %v1767_v58 = vmax.f32 %v1631_v52, 0.0  ;;  %v3858_v22 = vld [vmem:[%s4914_s8 + $0x258] sm:$0xff]   ;;  %v3881_v1 = vld [vmem:[%s4914_s8 + $0x380] sm:$0xff]  }
 0xc62   : > { %v3859_v23 = vld [vmem:[%s4914_s8 + $0x2d8] sm:$0xff]  }
 0xc63   : > { %3522 = vmatpush3.bf16.msra.mxu1 %v3828_v20  ;;  %3544 = vmatpush3.bf16.msra.mxu0 %v3829_v21  ;;  %v1783_v6 = vpack.c.bf16 %v1767_v58, %v1767_v58  ;;  %v3855_v20 = vld [vmem:[%s4914_s8 + $0x2d0] sm:$0xff]   ;;  %v3891_v58 = vld [vmem:[%s4914_s8 + $0x3d8] sm:$0xff]  }
 0xc64   : > { %3523 = vmatprep.subr.bf16.mxu1 %v3830_v24  ;;  %3545 = vmatprep.subr.bf16.mxu0 %v3831_v27  ;;  %v3856_v21 = vld [vmem:[%s4914_s8 + $0x210] sm:$0xff]   ;;  %v3860_v24 = vld [vmem:[%s4914_s8 + $0x218] sm:$0xff]  }
 0xc65   : > { %v1710_v32 = vpop.f32.mrb[36].mxu1  ;;  %v1751_v33 = vpop.f32.mrb[40].mxu0  ;;  %v3861_v27 = vld [vmem:[%s4914_s8 + $0x298] sm:$0xff]  }
 0xc66   : > { %v4591_v34 = vadd.f32 %v1710_v32, %v1238_v10  ;;  %v4594_v35 = vadd.f32 %v1751_v33, %v4492_v4  ;;  %v4596_v36 = vpop.f32.mrb[37].mxu1  ;;  %v4598_v37 = vpop.f32.mrb[41].mxu0  ;;  %v1214_v4 = vrot.slane %v4499_v8, %v1213_v0  ;;  %v1234_v0 = vrot.slane %v4487_v2, %v1201_v11  ;;  %v3840_v8 = vld [vmem:[%s4914_s8 + $0x130] sm:$0xff]   ;;  %v3843_v11 = vld [vmem:[%s4914_s8 + $0x1f8] sm:$0xff]   ;;  %v3862_v10 = vld [vmem:[%s4914_s8 + $0x260] sm:$0xff]  }
 0xc67   : > { %3524 = vmatpush3.bf16.msra.mxu1 %v3832_v28  ;;  %3546 = vmatpush3.bf16.msra.mxu0 %v3833_v29  ;;  %v1714_v38 = vpop.f32.mrb[38].mxu1  ;;  %v1755_v39 = vpop.f32.mrb[42].mxu0  ;;  %v3863_v28 = vld [vmem:[%s4914_s8 + $0x2e0] sm:$0xff]   ;;  %v3867_v32 = vld [vmem:[%s4914_s8 + $0x2e8] sm:$0xff]  }
 0xc68   : > { %v1715_v45 = vpop.f32.mrb[39].mxu1  ;;  %v1756_v46 = vpop.f32.mrb[43].mxu0  ;;  %3525 = vmatprep.subr.bf16.mxu1 %v3834_v30  ;;  %3547 = vmatprep.subr.bf16.mxu0 %v3835_v31  ;;  %v1588_v51 = vadd.f32 %v4533_v43, %v1214_v4  ;;  %v1672_v7 = vadd.f32 %v1671_v17, %v1234_v0  ;;  %v3845_v43 = vld [vmem:[%s4914_s8 + $0x1b8] sm:$0xff]   ;;  %v3852_v17 = vld [vmem:[%s4914_s8 + $0x208] sm:$0xff]   ;;  %v3864_v29 = vld [vmem:[%s4914_s8 + $0x220] sm:$0xff]  }
 0xc69   : > { %v3865_v30 = vld [vmem:[%s4914_s8 + $0x2a0] sm:$0xff]   ;;  %v3866_v31 = vld [vmem:[%s4914_s8 + $0x268] sm:$0xff]   ;;  %v3870_v39 = vld [vmem:[%s4914_s8 + $0x270] sm:$0xff]  }
 0xc6a   : > { %v1764_v55 = vmax.f32 %v1588_v51, 0.0  ;;  %v1769_v59 = vmax.f32 %v1672_v7, 0.0  ;;  %v3868_v33 = vld [vmem:[%s4914_s8 + $0x228] sm:$0xff]   ;;  %v3872_v4 = vld [vmem:[%s4914_s8 + $0x230] sm:$0xff]   ;;  %v3874_v46 = vld [vmem:[%s4914_s8 + $0x278] sm:$0xff]  }
 0xc6b   : > { %3526 = vmatpush3.bf16.msra.mxu1 %v3836_v40  ;;  %3548 = vmatpush3.bf16.msra.mxu0 %v3837_v41  ;;  %v3869_v38 = vld [vmem:[%s4914_s8 + $0x2a8] sm:$0xff]   ;;  %v3871_v40 = vld [vmem:[%s4914_s8 + $0x2f0] sm:$0xff]   ;;  %v1242_v41 = vrot.slane %v4487_v2, %v1209_v25  ;;  %v1754_v25 = vadd.f32 %v4598_v37, %v1250_v44  ;;  %v3879_v37 = vld [vmem:[%s4914_s8 + $0x3c0] sm:$0xff]  }
 0xc6c   : > { %3527 = vmatprep.subr.bf16.mxu1 %v3838_v47  ;;  %3549 = vmatprep.subr.bf16.mxu0 %v3839_v48  ;;  %v1780_v62 = vpack.c.bf16 %v1764_v55, %v1764_v55  ;;  %v1785_v16 = vpack.c.bf16 %v1769_v59, %v1769_v59  ;;  %v3873_v45 = vld [vmem:[%s4914_s8 + $0x2b0] sm:$0xff]   ;;  %v1766_v47 = vmax.f32 %v4561_v14, 0.0  ;;  %v3877_v48 = vld [vmem:[%s4914_s8 + $0x2b8] sm:$0xff]   ;;  %v3880_v14 = vld [vmem:[%s4914_s8 + $0x300] sm:$0xff]  }
 0xc6d   : > { %v1713_v2 = vadd.f32 %v4596_v36, %v1242_v41  ;;  %v1768_v36 = vmax.f32 %v4563_v15, 0.0  ;;  %v3882_v51 = vld [vmem:[%s4914_s8 + $0x348] sm:$0xff]   ;;  %v3888_v55 = vld [vmem:[%s4914_s8 + $0x310] sm:$0xff]   ;;  %v3892_v59 = vld [vmem:[%s4914_s8 + $0x318] sm:$0xff]  }
 0xc6e   : > { %v3884_v7 = vld [vmem:[%s4914_s8 + $0x308] sm:$0xff]  }
 0xc6f   : > { %3528 = vmatpush3.bf16.msra.mxu1 %v3840_v8  ;;  %3550 = vmatpush3.bf16.msra.mxu0 %v3841_v50  ;;  %v1771_v0 = vmax.f32 %v1713_v2, 0.0  ;;  %v1773_v8 = vmax.f32 %v1754_v25, 0.0  ;;  %v1782_v50 = vpack.c.bf16 %v1766_v47, %v1766_v47  ;;  %v1784_v15 = vpack.c.bf16 %v1768_v36, %v1768_v36 }
 0xc70   : > { %3529 = vmatprep.subr.bf16.mxu1 %v3842_v9  ;;  %3551 = vmatprep.subr.bf16.mxu0 %v3843_v11  ;;  %v3883_v11 = vld [vmem:[%s4914_s8 + $0x3c8] sm:$0xff]  }
 0xc71   : > { %v1787_v9 = vpack.c.bf16 %v1771_v0, %v1771_v0  ;;  %v1789_v52 = vpack.c.bf16 %v1773_v8, %v1773_v8 }
 0xc73   : > { %3530 = vmatpush3.bf16.msra.mxu1 %v3844_v42  ;;  %3552 = vmatpush3.bf16.msra.mxu0 %v3845_v43  ;;  %v3885_v42 = vld [vmem:[%s4914_s8 + $0x388] sm:$0xff]   ;;  %v3886_v43 = vld [vmem:[%s4914_s8 + $0x350] sm:$0xff]  }
 0xc74   : > { %3559 = vmatprep.subr.bf16.mxu1 %v3846_v56  ;;  %3581 = vmatprep.subr.bf16.mxu0 %v3847_v57  ;;  %v3889_v56 = vld [vmem:[%s4914_s8 + $0x390] sm:$0xff]   ;;  %v3890_v57 = vld [vmem:[%s4914_s8 + $0x358] sm:$0xff]  }
 0xc76   : > { %2934 = vmatmul.mubr.bf16.vlgmr.msra.gmra.mrb[44].mxu1 %v1778_v61  ;;  %2974 = vmatmul.mubr.bf16.vlgmr.msra.gmra.mrb[48].mxu0 %v1780_v62  ;;  %v3894_v61 = vld [vmem:[%s4914_s8 + $0x360] sm:$0xff]  }
 0xc77   : > { %3560 = vmatpush3.bf16.msra.mxu1 %v3848_v60  ;;  %3013 = vmatprep.mubr.bf16.mxu1 %v1783_v6  ;;  %v3893_v60 = vld [vmem:[%s4914_s8 + $0x398] sm:$0xff]   ;;  %v3895_v62 = vld [vmem:[%s4914_s8 + $0x3e0] sm:$0xff]  }
 0xc78   : > { %3582 = vmatpush3.bf16.msra.mxu0 %v3849_v5  ;;  %3053 = vmatprep.mubr.bf16.mxu0 %v1785_v16  ;;  %v3896_v5 = vld [vmem:[%s4914_s8 + $0x320] sm:$0xff]   ;;  %v3900_v16 = vld [vmem:[%s4914_s8 + $0x328] sm:$0xff]  }
 0xc79   : > { %3561 = vmatprep.subr.bf16.mxu1 %v3850_v12  ;;  %3583 = vmatprep.subr.bf16.mxu0 %v3851_v13  ;;  %v3897_v6 = vld [vmem:[%s4914_s8 + $0x3a0] sm:$0xff]   ;;  %v3898_v12 = vld [vmem:[%s4914_s8 + $0x368] sm:$0xff]  }
 0xc7a   : > { %v3899_v13 = vld [vmem:[%s4914_s8 + $0x3e8] sm:$0xff]  }
 0xc7b   : > { %3562 = vmatpush3.bf16.msra.mxu1 %v3852_v17  ;;  %v3901_v17 = vld [vmem:[%s4914_s8 + $0x3a8] sm:$0xff]  }
 0xc7c   : > { %3584 = vmatpush3.bf16.msra.mxu0 %v3853_v18  ;;  %3563 = vmatprep.subr.bf16.mxu1 %v3854_v19  ;;  %v3902_v18 = vld [vmem:[%s4914_s8 + $0x370] sm:$0xff]  }
 0xc7d   : > { %3585 = vmatprep.subr.bf16.mxu0 %v3855_v20  ;;  %v3903_v19 = vld [vmem:[%s4914_s8 + $0x3f0] sm:$0xff]  }
 0xc7e   : > { %v3904_v20 = vld [vmem:[%s4914_s8 + $0x330] sm:$0xff]  }
 0xc7f   : > { %3564 = vmatpush3.bf16.msra.mxu1 %v3856_v21  ;;  %v3905_v21 = vld [vmem:[%s4914_s8 + $0x3b0] sm:$0xff]  }
 0xc80   : > { %3586 = vmatpush3.bf16.msra.mxu0 %v3857_v3  ;;  %3565 = vmatprep.subr.bf16.mxu1 %v3858_v22  ;;  %v3906_v3 = vld [vmem:[%s4914_s8 + $0x378] sm:$0xff]  }
 0xc81   : > { %3587 = vmatprep.subr.bf16.mxu0 %v3859_v23  ;;  %v3907_v22 = vld [vmem:[%s4914_s8 + $0x3f8] sm:$0xff]  }
 0xc82   : > { %v3908_v23 = vld [vmem:[%s4914_s8 + $0x338] sm:$0xff]  }
 0xc83   : > { %3566 = vmatpush3.bf16.msra.mxu1 %v3860_v24  ;;  %v1770_v24 = vmax.f32 %v4591_v34, 0.0  ;;  %v3309_v34 = vld [vmem:[%s4915_s9] ss:$0 sm:$0xff] }
 0xc84   : > { %3588 = vmatpush3.bf16.msra.mxu0 %v3861_v27  ;;  %3567 = vmatprep.subr.bf16.mxu1 %v3862_v10  ;;  %v3909_v27 = vld [vmem:[%s4914_s8 + $0x3b8] sm:$0xff]   ;;  %v1772_v10 = vmax.f32 %v4594_v35, 0.0 }
 0xc85   : > { %3589 = vmatprep.subr.bf16.mxu0 %v3863_v28  ;;  %v1786_v28 = vpack.c.bf16 %v1770_v24, %v1770_v24 }
 0xc87   : > { %3568 = vmatpush3.bf16.msra.mxu1 %v3864_v29  ;;  %v1788_v29 = vpack.c.bf16 %v1772_v10, %v1772_v10 }
 0xc88   : > { %3590 = vmatpush3.bf16.msra.mxu0 %v3865_v30  ;;  %3569 = vmatprep.subr.bf16.mxu1 %v3866_v31 }
 0xc89   : > { %3591 = vmatprep.subr.bf16.mxu0 %v3867_v32 }
 0xc8b   : > { %3570 = vmatpush3.bf16.msra.mxu1 %v3868_v33 }
 0xc8c   : > { %3592 = vmatpush3.bf16.msra.mxu0 %v3869_v38  ;;  %3571 = vmatprep.subr.bf16.mxu1 %v3870_v39 }
 0xc8d   : > { %3593 = vmatprep.subr.bf16.mxu0 %v3871_v40 }
 0xc8f   : > { %3572 = vmatpush3.bf16.msra.mxu1 %v3872_v4 }
 0xc90   : > { %3594 = vmatpush3.bf16.msra.mxu0 %v3873_v45  ;;  %3573 = vmatprep.subr.bf16.mxu1 %v3874_v46 }
 0xc91   : > { %3595 = vmatprep.subr.bf16.mxu0 %v3875_v63 }
 0xc93   : > { %3574 = vmatpush3.bf16.msra.mxu1 %v3876_v26 }
 0xc94   : > { %3596 = vmatpush3.bf16.msra.mxu0 %v3877_v48  ;;  %3603 = vmatprep.subr.bf16.mxu1 %v3878_v49 }
 0xc95   : > { %3625 = vmatprep.subr.bf16.mxu0 %v3879_v37 }
 0xc96   : > { %3014 = vmatmul.mubr.bf16.vlgmr.msra.gmra.mrb[48].mxu1 %v1782_v50 }
 0xc97   : > { %3054 = vmatmul.mubr.bf16.vlgmr.msra.gmra.mrb[52].mxu0 %v1784_v15  ;;  %3604 = vmatpush3.bf16.msra.mxu1 %v3880_v14 }
 0xc98   : > { %3093 = vmatprep.mubr.bf16.mxu1 %v1787_v9  ;;  %3626 = vmatpush3.bf16.msra.mxu0 %v3881_v1 }
 0xc99   : > { %3133 = vmatprep.mubr.bf16.mxu0 %v1789_v52  ;;  %3605 = vmatprep.subr.bf16.mxu1 %v3882_v51 }
 0xc9a   : > { %3627 = vmatprep.subr.bf16.mxu0 %v3883_v11 }
 0xc9b   : > { %3606 = vmatpush3.bf16.msra.mxu1 %v3884_v7 }
 0xc9c   : > { %3628 = vmatpush3.bf16.msra.mxu0 %v3885_v42  ;;  %3607 = vmatprep.subr.bf16.mxu1 %v3886_v43 }
 0xc9d   : > { %3629 = vmatprep.subr.bf16.mxu0 %v3887_v54 }
 0xc9f   : > { %3608 = vmatpush3.bf16.msra.mxu1 %v3888_v55 }
 0xca0   : > { %3630 = vmatpush3.bf16.msra.mxu0 %v3889_v56  ;;  %3609 = vmatprep.subr.bf16.mxu1 %v3890_v57 }
 0xca1   : > { %3631 = vmatprep.subr.bf16.mxu0 %v3891_v58 }
 0xca3   : > { %3610 = vmatpush3.bf16.msra.mxu1 %v3892_v59 }
 0xca4   : > { %3632 = vmatpush3.bf16.msra.mxu0 %v3893_v60  ;;  %3611 = vmatprep.subr.bf16.mxu1 %v3894_v61 }
 0xca5   : > { %3633 = vmatprep.subr.bf16.mxu0 %v3895_v62 }
 0xca7   : > { %3612 = vmatpush3.bf16.msra.mxu1 %v3896_v5 }
 0xca8   : > { %3634 = vmatpush3.bf16.msra.mxu0 %v3897_v6  ;;  %3613 = vmatprep.subr.bf16.mxu1 %v3898_v12 }
 0xca9   : > { %3635 = vmatprep.subr.bf16.mxu0 %v3899_v13 }
 0xcab   : > { %3614 = vmatpush3.bf16.msra.mxu1 %v3900_v16 }
 0xcac   : > { %3636 = vmatpush3.bf16.msra.mxu0 %v3901_v17  ;;  %3615 = vmatprep.subr.bf16.mxu1 %v3902_v18 }
 0xcad   : > { %3637 = vmatprep.subr.bf16.mxu0 %v3903_v19 }
 0xcaf   : > { %3616 = vmatpush3.bf16.msra.mxu1 %v3904_v20 }
 0xcb0   : > { %3638 = vmatpush3.bf16.msra.mxu0 %v3905_v21  ;;  %3617 = vmatprep.subr.bf16.mxu1 %v3906_v3 }
 0xcb1   : > { %3639 = vmatprep.subr.bf16.mxu0 %v3907_v22 }
 0xcb3   : > { %3618 = vmatpush3.bf16.msra.mxu1 %v3908_v23 }
 0xcb4   : > { %3640 = vmatpush3.bf16.msra.mxu0 %v3909_v27 }
 0xcb6   : > { %3094 = vmatmul.mubr.bf16.vlgmr.msra.gmra.mrb[52].mxu1 %v1786_v28  ;;  %v3439_v28 = vld [vmem:[%s4917_s11] ss:$0 sm:$0xff] }
 0xcb7   : > { %3134 = vmatmul.mubr.bf16.vlgmr.msra.gmra.mrb[56].mxu0 %v1788_v29 }
 0xd29   : > { %v3487_v30 = vpop.f32.mrb[40].mxu1  ;;  %v3509_v31 = vpop.f32.mrb[44].mxu0 }
 0xd2a   : > { %v3488_v32 = vpop.f32.mrb[41].mxu1  ;;  %v3510_v33 = vpop.f32.mrb[45].mxu0 }
 0xd2b   : > { %v3489_v38 = vadd.f32 %v3488_v32, %v3487_v30  ;;  %v3511_v39 = vadd.f32 %v3510_v33, %v3509_v31  ;;  %v3490_v40 = vpop.f32.mrb[42].mxu1  ;;  %v3512_v41 = vpop.f32.mrb[46].mxu0 }
 0xd2c   : > { %v3491_v35 = vpop.f32.mrb[43].mxu1  ;;  %v3513_v44 = vpop.f32.mrb[47].mxu0 }
 0xd2d   : > { %v2856_v4 = vadd.f32 %v3489_v38, %v3309_v34 }
 0xd2f   : > { %v2896_v45 = vadd.f32 %v3511_v39, %v2856_v4 }
 0xd49   : > { %v3531_v46 = vpop.f32.mrb[44].mxu1  ;;  %v3553_v63 = vpop.f32.mrb[48].mxu0 }
 0xd4a   : > { %v3532_v2 = vpop.f32.mrb[45].mxu1  ;;  %v3554_v25 = vpop.f32.mrb[49].mxu0 }
 0xd4b   : > { %v3533_v26 = vadd.f32 %v3532_v2, %v3531_v46  ;;  %v3555_v47 = vadd.f32 %v3554_v25, %v3553_v63  ;;  %v3534_v48 = vpop.f32.mrb[46].mxu1  ;;  %v3556_v49 = vpop.f32.mrb[50].mxu0 }
 0xd4c   : > { %v3535_v36 = vpop.f32.mrb[47].mxu1  ;;  %v3557_v37 = vpop.f32.mrb[51].mxu0 }
 0xd4d   : > { %v2936_v0 = vadd.f32 %v3533_v26, %v2896_v45 }
 0xd4f   : > { %v2976_v8 = vadd.f32 %v3555_v47, %v2936_v0 }
 0xd69   : > { %v3575_v14 = vpop.f32.mrb[48].mxu1 }
 0xd6a   : > { %v3597_v50 = vpop.f32.mrb[52].mxu0  ;;  %v3576_v1 = vpop.f32.mrb[49].mxu1 }
 0xd6b   : > { %v3577_v15 = vadd.f32 %v3576_v1, %v3575_v14  ;;  %v3598_v51 = vpop.f32.mrb[53].mxu0  ;;  %v3578_v9 = vpop.f32.mrb[50].mxu1 }
 0xd6c   : > { %v3599_v11 = vadd.f32 %v3598_v51, %v3597_v50  ;;  %v3600_v52 = vpop.f32.mrb[54].mxu0  ;;  %v3579_v7 = vpop.f32.mrb[51].mxu1 }
 0xd6d   : > { %v3016_v42 = vadd.f32 %v3577_v15, %v2976_v8  ;;  %v3601_v43 = vpop.f32.mrb[55].mxu0 }
 0xd6f   : > { %v3056_v54 = vadd.f32 %v3599_v11, %v3016_v42 }
 0xd89   : > { %v3619_v55 = vpop.f32.mrb[52].mxu1 }
 0xd8a   : > { %v3641_v56 = vpop.f32.mrb[56].mxu0  ;;  %v3620_v57 = vpop.f32.mrb[53].mxu1 }
 0xd8b   : > { %v3621_v58 = vadd.f32 %v3620_v57, %v3619_v55  ;;  %v3642_v59 = vpop.f32.mrb[57].mxu0  ;;  %v3622_v60 = vpop.f32.mrb[54].mxu1 }
 0xd8c   : > { %v3643_v61 = vadd.f32 %v3642_v59, %v3641_v56  ;;  %v3644_v62 = vpop.f32.mrb[58].mxu0  ;;  %v3623_v5 = vpop.f32.mrb[55].mxu1 }
 0xd8d   : > { %v3096_v6 = vadd.f32 %v3621_v58, %v3056_v54  ;;  %v3645_v12 = vpop.f32.mrb[59].mxu0 }
 0xd8f   : > { %v3136_v13 = vadd.f32 %v3643_v61, %v3096_v6 }
 0xd91   : > { %v3141_v16 = vadd.f32 %v3136_v13, %v4303_v53  ;;  %v3438_v53 = vld [vmem:[%s4916_s10] ss:$0 sm:$0xff] }
 0xd93   : > { %v3142_v17 = vsel %vm428_vm1, %v3141_v16, 0.0 }
 0xd94   : > { %3143 = vadd.xlane.f32.xlu1 %v3142_v17 }
 0xe21   : > { %v3144_v18 = vpop.xlane.xlu1 %3143 }
 0xe22   : > { %v3145_v19 = vmul.f32 0.03125, %v3144_v18 }
 0xe24   : > { %v3146_v20 = vsub.f32 %v3141_v16, %v3145_v19 }
 0xe26   : > { %v3147_v21 = vmul.f32 %v3146_v20, %v3146_v20 }
 0xe28   : > { %v3148_v3 = vsel %vm428_vm1, %v3147_v21, 0.0 }
 0xe29   : > { %3149 = vadd.xlane.f32.xlu1 %v3148_v3 }
 0xeb6   : > { %v3150_v22 = vpop.xlane.xlu1 %3149 }
 0xeb7   : > { %v3151_v23 = vmul.f32 0.03125, %v3150_v22 }
 0xeb9   : > { %v3152_v24 = vadd.f32 1e-05, %v3151_v23 }
 0xebb   : > { %3928 = vrsqrt.f32 %v3152_v24 }
 0xec5   : > { %v3929_v27 = vpop.eup %3928 }
 0xec6   : > { %v3154_v10 = vmul.f32 %v3929_v27, %v3146_v20 }
 0xec8   : > { %v3162_v29 = vmul.f32 %v3438_v53, %v3154_v10 }
 0xeca   : > { %v3170_v30 = vadd.f32 %v3439_v28, %v3162_v29 }
 0xecc   : > { %3171 = vst.msk [vmem:[%s404_s18] sm:$0xff] %vm428_vm1, %v3170_v30 }
 0xecd   : > { %3943 = shalt.err (!%p3940_p3)
}
 0xece   : > { %s3944_s1 = scalar_lea.hbm %s4863_s2, 128  ;;  %s3948_s17 = scalar_lea.hbm %s4918_s12, 256 }
 0xecf   : > { %p3945_p4 = scmp.ne.s32.totalorder %s4863_s2, %s3944_s1  ;;  %p3949_p9 = scmp.lt.u32.totalorder %s4863_s2, %s4918_s12 }
 0xed0   : > { %p3950_p10 = scmp.lt.u32.totalorder %s3948_s17, %s3944_s1  ;;  %p3952_p12 = scmp.lt.u32.totalorder %s3944_s1, %s4863_s2 }
 0xed1   : > { %p3946_p7 = pnand %p3945_p4, %p4112_p5 }
 0xed2   : > { %p3951_p11 = por %p3950_p10, %p3949_p9 }
 0xed3   : > { %p3947_p8 = pneg %p3946_p7 }
 0xed4   : > { %p3953_p13 = por %p3952_p12, %p3951_p11 }
 0xed6   : > { %p3954_p0 = pnand %p3953_p13, %p3947_p8 }
 0xed8   : > { %3957 = shalt.err (!%p3954_p0)
}
 0xed9   : > { %3727 = dma.vmem_to_hbm [thread:$0]  (%p4112_p5), %s4865_s19, 128, %s4863_s2, %s3173_s28  }
 0xeda PF: > { %p3733_p1 = scmp.ge.s32.totalorder %s3992_s24, 2  ;;  %s3198_s29 = sand.u32 1, %s3980_s21  }
 0xedb   : > { %s3199_s25 = scalar_lea.sflag [#allocation3], %s3198_s29 }
 0xedc   : > { %p3730_p2 = pnand %p3733_p1, %p4116_p6 }
 0xede   : > { %3975 = dma.done.wait (!%p3730_p2), %s3199_s25, 128  }
 0xedf   : > { %3977 = vsyncadd (!%p3730_p2), %s3199_s25, 4294967168  ;;  %p22_p3 = scmp.ge.s32.totalorder %s4099_s27, 4   ;;  %s4927_s21 = smov %s3984_s22 }
 0xee0   : > { %s4928_s22 = smov %s3988_s23  ;;  %s4929_s23 = smov %s4110_s30 }
 0xee1   : > { %s4930_s24 = smov %s4099_s27  ;;  %24 = sbr.rel (!%p22_p3) target bundleno = 7 (0x7), region = 103 }
 0xee8   :  { %3204 = vsyncpa [#allocation3], 1 }
 0xee9   :  { %3206 = vsyncpa [#allocation3 + $0x1], 1 }

</bundles_post_ra>
